<compile_context>
chip_gen: v6e
topology: v6e:2x2x1
jax: 0.10.0
libtpu: 0.0.40
codegen_flags: <defaults>
</compile_context>

<pallas_src>
import jax
import jax.numpy as jnp
from jax.experimental import pallas as pl
from jax.experimental.pallas import tpu as pltpu

HIDDEN = 64  # LSTM hidden size (fixed by the PyTorch module)


def make_params(input_size, key):
    """Deterministic parameters in PyTorch LSTM/Linear shapes, transformed for
    the kernel: gate columns reordered (i,f,g,o) -> (i,f,o,g), weights
    pre-transposed to (in, out), layer-2 W_ih / W_hh kept separate, biases
    combined (b_ih + b_hh). All f32 masters; the wrapper packs/casts."""
    D = input_size + 2
    H = HIDDEN
    ks = jax.random.split(key, 14)
    s = 0.1

    def rnd(k, shape):
        return (s * jax.random.normal(k, shape)).astype(jnp.float32)

    def reorder(w):
        # rows are gate-major (4H, ...): PyTorch (i, f, g, o) -> (i, f, o, g)
        return jnp.concatenate(
            [w[0:H], w[H:2 * H], w[3 * H:4 * H], w[2 * H:3 * H]], axis=0)

    # LSTM layer 0: W_ih (4H, D), W_hh (4H, H), b_ih/b_hh (4H,)
    wih1_t = rnd(ks[0], (4 * H, D))
    whh1_t = rnd(ks[1], (4 * H, H))
    b1_v = rnd(ks[2], (4 * H,)) + rnd(ks[3], (4 * H,))
    # LSTM layer 1: W_ih (4H, H), W_hh (4H, H)
    wih2_t = rnd(ks[4], (4 * H, H))
    whh2_t = rnd(ks[5], (4 * H, H))
    b2_v = rnd(ks[6], (4 * H,)) + rnd(ks[7], (4 * H,))

    params = dict(
        wih1=reorder(wih1_t).T,                                   # (D, 4H)
        b1=reorder(b1_v.reshape(4 * H, 1)).reshape(1, 4 * H),
        whh1=reorder(whh1_t).T,                                   # (H, 4H)
        w2_ih=reorder(wih2_t).T,                                  # (H, 4H)
        w2_hh=reorder(whh2_t).T,                                  # (H, 4H)
        b2=reorder(b2_v.reshape(4 * H, 1)).reshape(1, 4 * H),
        # dense1 (32,64), dense2 (16,32), classifier (1,16) -> transposed
        wd1=rnd(ks[8], (32, H)).T,
        bd1=rnd(ks[9], (32,)).reshape(1, 32),
        wd2=rnd(ks[10], (16, 32)).T,
        bd2=rnd(ks[11], (16,)).reshape(1, 16),
        wc=rnd(ks[12], (1, 16)).T,
        bc=rnd(ks[13], (1,)).reshape(1, 1),
    )
    return params


def discriminator_forward(beatmap_features, position_output, params,
                          *, time_tile_cap=128, mxu_dtype=jnp.bfloat16):
    H = HIDDEN
    B, T, _ = beatmap_features.shape
    hp = jax.lax.Precision.HIGHEST

    # ---- host-side (XLA): concat + time-major in one fused copy -------------
    x = jnp.concatenate(
        [jnp.swapaxes(beatmap_features, 0, 1),
         jnp.swapaxes(position_output, 0, 1)],
        axis=-1,
    ).astype(jnp.float32)                                          # (T, B, D)
    D = x.shape[-1]

    # Pad batch to the f32 sublane multiple (8).
    B_pad = max(8, ((B + 7) // 8) * 8)
    if B_pad != B:
        x = jnp.pad(x, ((0, 0), (0, B_pad - B), (0, 0)))

    # Layer-1 input projection hoisted out of the kernel: one big lane-dense
    # (T*B_pad, D) @ (D, 256) matmul, bias folded in.
    pre1 = (jnp.dot(x.reshape(T * B_pad, D), params["wih1"], precision=hp)
            + params["b1"]).reshape(T, B_pad, 4 * H)

    # ---- time tiling (pad T to a tile multiple; guard tail steps in-kernel) -
    T_TILE = min(T, time_tile_cap)
    n_tiles = pl.cdiv(T, T_TILE)
    T_pad = n_tiles * T_TILE
    tail = T % T_TILE
    if T_pad != T:
        pre1 = jnp.pad(pre1, ((0, T_pad - T), (0, 0), (0, 0)))

    # Packed recurrent weights [whh1 | w2_ih | w2_hh], bf16 at the MXU input.
    wrec = jnp.concatenate(
        [params["whh1"], params["w2_ih"], params["w2_hh"]], axis=1
    ).astype(mxu_dtype)                                            # (H, 12H)
    b2 = params["b2"]
    head = (params["wd1"], params["bd1"], params["wd2"], params["bd2"],
            params["wc"], params["bc"])

    unrolled = T_TILE <= 32

    def kernel(pre1_ref,                       # (T_TILE, B, 4H) f32
               wrec_ref,                       # (H, 12H) bf16 resident
               b2_ref,                         # (1, 4H) f32
               wd1_ref, bd1_ref, wd2_ref, bd2_ref, wc_ref, bc_ref,
               out_ref,                        # (B, 1)
               h1_ref, c1_ref, h2_ref, c2_ref  # (B, H) f32 persistent state
               ):
        t_id = pl.program_id(0)

        # zero-init LSTM state only on the first time-tile
        @pl.when(t_id == 0)
        def _():
            h1_ref[...] = jnp.zeros_like(h1_ref)
            c1_ref[...] = jnp.zeros_like(c1_ref)
            h2_ref[...] = jnp.zeros_like(h2_ref)
            c2_ref[...] = jnp.zeros_like(c2_ref)

        # hoist resident weight loads out of the time loop
        whh1 = wrec_ref[:, 0 * 4 * H:1 * 4 * H]
        w2_ih = wrec_ref[:, 1 * 4 * H:2 * 4 * H]
        w2_hh = wrec_ref[:, 2 * 4 * H:3 * 4 * H]
        b2v = b2_ref[...]

        def cell(gates, c_prev):
            # gate order (i, f, o, g): one 3H-lane sigmoid + one H-lane tanh
            sg = jax.nn.sigmoid(gates[:, :3 * H])
            g = jnp.tanh(gates[:, 3 * H:])
            i = sg[:, :H]
            f = sg[:, H:2 * H]
            o = sg[:, 2 * H:]
            c_new = f * c_prev + i * g
            return o * jnp.tanh(c_new), c_new

        def step(t, valid, carry):
            h1, c1, h2, c2 = carry
            pre1_t = pre1_ref[t]                              # (B, 4H) f32
            # layer-2 recurrent dot depends only on the *previous* h2: issue
            # it first so it overlaps layer-1's sigmoid/tanh latency.
            g2_rec = jnp.dot(h2.astype(mxu_dtype), w2_hh,
                             preferred_element_type=jnp.float32) + b2v
            g1 = pre1_t + jnp.dot(h1.astype(mxu_dtype), whh1,
                                  preferred_element_type=jnp.float32)
            h1n, c1n = cell(g1, c1)
            g2 = g2_rec + jnp.dot(h1n.astype(mxu_dtype), w2_ih,
                                  preferred_element_type=jnp.float32)
            h2n, c2n = cell(g2, c2)
            # inter-layer dropout p=0.2 is identity in eval mode
            if valid is None:
                return h1n, c1n, h2n, c2n
            return (jnp.where(valid, h1n, h1), jnp.where(valid, c1n, c1),
                    jnp.where(valid, h2n, h2), jnp.where(valid, c2n, c2))

        carry = (h1_ref[...], c1_ref[...], h2_ref[...], c2_ref[...])
        if unrolled:
            # fully unrolled short tile: max scheduler visibility
            last_tile = t_id == pl.num_programs(0) - 1
            for t in range(T_TILE):
                valid = None
                if tail and t >= tail:         # only possibly-padded steps pay
                    valid = jnp.logical_not(last_tile)
                carry = step(t, valid, carry)
        else:
            base = t_id * T_TILE
            def body(t, c):
                valid = (base + t) < T if tail else None
                return step(t, valid, c)
            carry = jax.lax.fori_loop(0, T_TILE, body, carry, unroll=8)
        h1, c1, h2, c2 = carry

        # spill state back to scratch only at the tile boundary
        h1_ref[...] = h1
        c1_ref[...] = c1
        h2_ref[...] = h2
        c2_ref[...] = c2

        # MLP head runs once, on the final time-tile
        @pl.when(t_id == pl.num_programs(0) - 1)
        def _():
            d1 = jnp.maximum(
                jnp.dot(h2, wd1_ref[...], preferred_element_type=jnp.float32)
                + bd1_ref[...], 0.0)
            d2 = jnp.maximum(
                jnp.dot(d1, wd2_ref[...], preferred_element_type=jnp.float32)
                + bd2_ref[...], 0.0)
            logit = (jnp.dot(d2, wc_ref[...],
                             preferred_element_type=jnp.float32) + bc_ref[...])
            out_ref[...] = jax.nn.sigmoid(logit)

        # TODO(synk): for large B on v7x, add a leading "parallel" batch-tile
        # grid axis (state scratch per batch block, time axis innermost) so
        # both TensorCores are used and MXU rows are filled.

    pre1_spec = pl.BlockSpec((T_TILE, B_pad, 4 * H), lambda t: (t, 0, 0))
    resident = lambda p: pl.BlockSpec(p.shape, lambda t: (0, 0))
    weight_ops = (wrec, b2) + head
    w_specs = [resident(p) for p in weight_ops]

    cost = pl.CostEstimate(
        flops=int(2 * T * B_pad * 3 * 4 * H * H),
        transcendentals=int(T * B_pad * 10 * H),
        bytes_accessed=int(4 * pre1.size + 2 * wrec.size
                           + 4 * sum(int(p.size) for p in (b2,) + head)
                           + 4 * B_pad),
    )

    out = pl.pallas_call(
        kernel,
        grid=(n_tiles,),
        in_specs=[pre1_spec] + w_specs,
        out_specs=pl.BlockSpec((B_pad, 1), lambda t: (0, 0)),
        out_shape=jax.ShapeDtypeStruct((B_pad, 1), jnp.float32),
        scratch_shapes=[pltpu.VMEM((B_pad, H), jnp.float32) for _ in range(4)],
        compiler_params=pltpu.CompilerParams(
            dimension_semantics=("arbitrary",)),
        cost_estimate=cost,
    )(pre1, *weight_ops)
    return out[:B]


def _reference_forward(beatmap_features, position_output, params):
    """Pure-JAX f32 (HIGHEST) reference with the same gate-reordered params."""
    H = HIDDEN
    hp = jax.lax.Precision.HIGHEST
    x = jnp.concatenate([beatmap_features, position_output],
                        axis=-1).astype(jnp.float32)               # (B, T, D)
    B, T, _ = x.shape
    h1 = jnp.zeros((B, H), jnp.float32)
    c1 = jnp.zeros_like(h1)
    h2 = jnp.zeros_like(h1)
    c2 = jnp.zeros_like(h1)

    def cell(gates, c_prev):
        sg = jax.nn.sigmoid(gates[:, :3 * H])
        g = jnp.tanh(gates[:, 3 * H:])
        i, f, o = sg[:, :H], sg[:, H:2 * H], sg[:, 2 * H:]
        c_new = f * c_prev + i * g
        return o * jnp.tanh(c_new), c_new

    for t in range(T):
        g1 = (jnp.dot(x[:, t, :], params["wih1"], precision=hp)
              + jnp.dot(h1, params["whh1"], precision=hp) + params["b1"])
        h1, c1 = cell(g1, c1)
        g2 = (jnp.dot(h1, params["w2_ih"], precision=hp)
              + jnp.dot(h2, params["w2_hh"], precision=hp) + params["b2"])
        h2, c2 = cell(g2, c2)
    d1 = jnp.maximum(jnp.dot(h2, params["wd1"], precision=hp)
                     + params["bd1"], 0.0)
    d2 = jnp.maximum(jnp.dot(d1, params["wd2"], precision=hp)
                     + params["bd2"], 0.0)
    return jax.nn.sigmoid(jnp.dot(d2, params["wc"], precision=hp)
                          + params["bc"])


if __name__ == "__main__":
    B, T, input_size = 2, 8, 4   # combined feature dim = input_size + 2 = 6
    key = jax.random.PRNGKey(0)
    k_feat, k_pos, k_param = jax.random.split(key, 3)

    beatmap_features = jax.random.normal(k_feat, (B, T, input_size), jnp.float32)
    position_output = jax.random.normal(k_pos, (B, T, 2), jnp.float32)
    params = make_params(input_size, k_param)

    out = discriminator_forward(beatmap_features, position_output, params)
    jax.block_until_ready(out)
    assert out.shape == (B, 1)

    ref = _reference_forward(beatmap_features, position_output, params)
    # bf16 at the MXU dot inputs (per perf review) vs f32 HIGHEST reference:
    # output is a sigmoid in ~[0.3, 0.7]; observed error << 1e-2.
    assert jnp.allclose(out, ref, atol=1e-2, rtol=1e-2), (out, ref)

    print("KERNEL_OK")
</pallas_src>

<mosaic_0001>
module attributes {stable_mosaic.version = 11 : i64} {
  func.func @kernel(%arg0: i32, %arg1: memref<8x8x256xf32, #tpu.memory_space<vmem>>, %arg2: memref<64x768xbf16, #tpu.memory_space<vmem>>, %arg3: memref<1x256xf32, #tpu.memory_space<vmem>>, %arg4: memref<64x32xf32, #tpu.memory_space<vmem>>, %arg5: memref<1x32xf32, #tpu.memory_space<vmem>>, %arg6: memref<32x16xf32, #tpu.memory_space<vmem>>, %arg7: memref<1x16xf32, #tpu.memory_space<vmem>>, %arg8: memref<16x1xf32, #tpu.memory_space<vmem>>, %arg9: memref<1x1xf32, #tpu.memory_space<vmem>>, %arg10: memref<8x1xf32, #tpu.memory_space<vmem>>, %arg11: memref<8x64xf32, #tpu.memory_space<vmem>>, %arg12: memref<8x64xf32, #tpu.memory_space<vmem>>, %arg13: memref<8x64xf32, #tpu.memory_space<vmem>>, %arg14: memref<8x64xf32, #tpu.memory_space<vmem>>) attributes {dimension_semantics = [#tpu.dimension_semantics<arbitrary>], iteration_bounds = array<i64: 1>, scalar_prefetch = 0 : i64, scratch_operands = 4 : i64, tpu.core_type = #tpu.core_type<tc>, window_params = [{transform_indices = @transform_0, window_bounds = array<i64: 8, 8, 256>}, {pipeline_mode = #tpu.pipeline_mode<synchronous>, transform_indices = @transform_1, window_bounds = array<i64: 64, 768>}, {pipeline_mode = #tpu.pipeline_mode<synchronous>, transform_indices = @transform_2, window_bounds = array<i64: 1, 256>}, {pipeline_mode = #tpu.pipeline_mode<synchronous>, transform_indices = @transform_3, window_bounds = array<i64: 64, 32>}, {pipeline_mode = #tpu.pipeline_mode<synchronous>, transform_indices = @transform_4, window_bounds = array<i64: 1, 32>}, {pipeline_mode = #tpu.pipeline_mode<synchronous>, transform_indices = @transform_5, window_bounds = array<i64: 32, 16>}, {pipeline_mode = #tpu.pipeline_mode<synchronous>, transform_indices = @transform_6, window_bounds = array<i64: 1, 16>}, {pipeline_mode = #tpu.pipeline_mode<synchronous>, transform_indices = @transform_7, window_bounds = array<i64: 16, 1>}, {pipeline_mode = #tpu.pipeline_mode<synchronous>, transform_indices = @transform_8, window_bounds = array<i64: 1, 1>}, {pipeline_mode = #tpu.pipeline_mode<synchronous>, transform_indices = @transform_9, window_bounds = array<i64: 8, 1>}]} {
    %c0_i32 = arith.constant 0 : i32
    %0 = arith.cmpi eq, %arg0, %c0_i32 : i32
    %1 = arith.extui %0 : i1 to i32
    %c0_i32_0 = arith.constant 0 : i32
    %2 = arith.cmpi ne, %1, %c0_i32_0 : i32
    scf.if %2 {
      %cst_80 = arith.constant 0.000000e+00 : f32
      %370 = vector.broadcast %cst_80 : f32 to vector<8x64xf32>
      %c0_81 = arith.constant 0 : index
      %c0_82 = arith.constant 0 : index
      %371 = vector.load %arg11[%c0_81, %c0_82] : memref<8x64xf32, #tpu.memory_space<vmem>>, vector<8x64xf32>
      tpu.vector_store %arg11[%c0_81, %c0_82], %370 {strides = array<i32>} : memref<8x64xf32, #tpu.memory_space<vmem>>, vector<8x64xf32>,
      %cst_83 = arith.constant 0.000000e+00 : f32
      %372 = vector.broadcast %cst_83 : f32 to vector<8x64xf32>
      %c0_84 = arith.constant 0 : index
      %c0_85 = arith.constant 0 : index
      %373 = vector.load %arg12[%c0_84, %c0_85] : memref<8x64xf32, #tpu.memory_space<vmem>>, vector<8x64xf32>
      tpu.vector_store %arg12[%c0_84, %c0_85], %372 {strides = array<i32>} : memref<8x64xf32, #tpu.memory_space<vmem>>, vector<8x64xf32>,
      %cst_86 = arith.constant 0.000000e+00 : f32
      %374 = vector.broadcast %cst_86 : f32 to vector<8x64xf32>
      %c0_87 = arith.constant 0 : index
      %c0_88 = arith.constant 0 : index
      %375 = vector.load %arg13[%c0_87, %c0_88] : memref<8x64xf32, #tpu.memory_space<vmem>>, vector<8x64xf32>
      tpu.vector_store %arg13[%c0_87, %c0_88], %374 {strides = array<i32>} : memref<8x64xf32, #tpu.memory_space<vmem>>, vector<8x64xf32>,
      %cst_89 = arith.constant 0.000000e+00 : f32
      %376 = vector.broadcast %cst_89 : f32 to vector<8x64xf32>
      %c0_90 = arith.constant 0 : index
      %c0_91 = arith.constant 0 : index
      %377 = vector.load %arg14[%c0_90, %c0_91] : memref<8x64xf32, #tpu.memory_space<vmem>>, vector<8x64xf32>
      tpu.vector_store %arg14[%c0_90, %c0_91], %376 {strides = array<i32>} : memref<8x64xf32, #tpu.memory_space<vmem>>, vector<8x64xf32>,
    } else {
    }
    %c0 = arith.constant 0 : index
    %c0_1 = arith.constant 0 : index
    %3 = vector.load %arg2[%c0, %c0_1] : memref<64x768xbf16, #tpu.memory_space<vmem>>, vector<64x256xbf16>
    %c0_2 = arith.constant 0 : index
    %c256 = arith.constant 256 : index
    %4 = vector.load %arg2[%c0_2, %c256] : memref<64x768xbf16, #tpu.memory_space<vmem>>, vector<64x256xbf16>
    %c0_3 = arith.constant 0 : index
    %c512 = arith.constant 512 : index
    %5 = vector.load %arg2[%c0_3, %c512] : memref<64x768xbf16, #tpu.memory_space<vmem>>, vector<64x256xbf16>
    %c0_4 = arith.constant 0 : index
    %c0_5 = arith.constant 0 : index
    %6 = vector.load %arg3[%c0_4, %c0_5] : memref<1x256xf32, #tpu.memory_space<vmem>>, vector<1x256xf32>
    %c0_6 = arith.constant 0 : index
    %c0_7 = arith.constant 0 : index
    %7 = vector.load %arg11[%c0_6, %c0_7] : memref<8x64xf32, #tpu.memory_space<vmem>>, vector<8x64xf32>
    %c0_8 = arith.constant 0 : index
    %c0_9 = arith.constant 0 : index
    %8 = vector.load %arg12[%c0_8, %c0_9] : memref<8x64xf32, #tpu.memory_space<vmem>>, vector<8x64xf32>
    %c0_10 = arith.constant 0 : index
    %c0_11 = arith.constant 0 : index
    %9 = vector.load %arg13[%c0_10, %c0_11] : memref<8x64xf32, #tpu.memory_space<vmem>>, vector<8x64xf32>
    %c0_12 = arith.constant 0 : index
    %c0_13 = arith.constant 0 : index
    %10 = vector.load %arg14[%c0_12, %c0_13] : memref<8x64xf32, #tpu.memory_space<vmem>>, vector<8x64xf32>
    %c0_14 = arith.constant 0 : index
    %c0_15 = arith.constant 0 : index
    %c0_16 = arith.constant 0 : index
    %11 = vector.load %arg1[%c0_14, %c0_15, %c0_16] : memref<8x8x256xf32, #tpu.memory_space<vmem>>, vector<1x8x256xf32>
    %12 = vector.shape_cast %11 : vector<1x8x256xf32> to vector<8x256xf32>
    %13 = arith.truncf %9 : vector<8x64xf32> to vector<8x64xbf16>
    %cst = arith.constant dense<0.000000e+00> : vector<8x256xf32>
    %14 = tpu.matmul %13, %5, %cst {dimension_numbers = #tpu.dot_dimension_numbers<[1], [0], [0], [1], [0, 0, 1, 1], [], []>} : vector<8x64xbf16>, vector<64x256xbf16>, vector<8x256xf32> -> vector<8x256xf32>
    %15 = vector.broadcast %6 : vector<1x256xf32> to vector<8x256xf32>
    %16 = arith.addf %14, %15 : vector<8x256xf32>
    %17 = arith.truncf %7 : vector<8x64xf32> to vector<8x64xbf16>
    %cst_17 = arith.constant dense<0.000000e+00> : vector<8x256xf32>
    %18 = tpu.matmul %17, %3, %cst_17 {dimension_numbers = #tpu.dot_dimension_numbers<[1], [0], [0], [1], [0, 0, 1, 1], [], []>} : vector<8x64xbf16>, vector<64x256xbf16>, vector<8x256xf32> -> vector<8x256xf32>
    %19 = arith.addf %12, %18 : vector<8x256xf32>
    %20 = vector.extract_strided_slice %19 {offsets = [0, 0], sizes = [8, 192], strides = [1, 1]} : vector<8x256xf32> to vector<8x192xf32>
    %21 = arith.negf %20 : vector<8x192xf32>
    %22 = math.exp %21 : vector<8x192xf32>
    %cst_18 = arith.constant 1.000000e+00 : f32
    %23 = vector.broadcast %cst_18 : f32 to vector<8x192xf32>
    %24 = arith.addf %23, %22 : vector<8x192xf32>
    %25 = arith.divf %23, %24 : vector<8x192xf32>
    %26 = vector.extract_strided_slice %19 {offsets = [0, 192], sizes = [8, 64], strides = [1, 1]} : vector<8x256xf32> to vector<8x64xf32>
    %27 = math.tanh %26 : vector<8x64xf32>
    %28 = vector.extract_strided_slice %25 {offsets = [0, 0], sizes = [8, 64], strides = [1, 1]} : vector<8x192xf32> to vector<8x64xf32>
    %29 = vector.extract_strided_slice %25 {offsets = [0, 64], sizes = [8, 64], strides = [1, 1]} : vector<8x192xf32> to vector<8x64xf32>
    %30 = vector.extract_strided_slice %25 {offsets = [0, 128], sizes = [8, 64], strides = [1, 1]} : vector<8x192xf32> to vector<8x64xf32>
    %31 = arith.mulf %29, %8 : vector<8x64xf32>
    %32 = arith.mulf %28, %27 : vector<8x64xf32>
    %33 = arith.addf %31, %32 : vector<8x64xf32>
    %34 = math.tanh %33 : vector<8x64xf32>
    %35 = arith.mulf %30, %34 : vector<8x64xf32>
    %36 = arith.truncf %35 : vector<8x64xf32> to vector<8x64xbf16>
    %cst_19 = arith.constant dense<0.000000e+00> : vector<8x256xf32>
    %37 = tpu.matmul %36, %4, %cst_19 {dimension_numbers = #tpu.dot_dimension_numbers<[1], [0], [0], [1], [0, 0, 1, 1], [], []>} : vector<8x64xbf16>, vector<64x256xbf16>, vector<8x256xf32> -> vector<8x256xf32>
    %38 = arith.addf %16, %37 : vector<8x256xf32>
    %39 = vector.extract_strided_slice %38 {offsets = [0, 0], sizes = [8, 192], strides = [1, 1]} : vector<8x256xf32> to vector<8x192xf32>
    %40 = arith.negf %39 : vector<8x192xf32>
    %41 = math.exp %40 : vector<8x192xf32>
    %cst_20 = arith.constant 1.000000e+00 : f32
    %42 = vector.broadcast %cst_20 : f32 to vector<8x192xf32>
    %43 = arith.addf %42, %41 : vector<8x192xf32>
    %44 = arith.divf %42, %43 : vector<8x192xf32>
    %45 = vector.extract_strided_slice %38 {offsets = [0, 192], sizes = [8, 64], strides = [1, 1]} : vector<8x256xf32> to vector<8x64xf32>
    %46 = math.tanh %45 : vector<8x64xf32>
    %47 = vector.extract_strided_slice %44 {offsets = [0, 0], sizes = [8, 64], strides = [1, 1]} : vector<8x192xf32> to vector<8x64xf32>
    %48 = vector.extract_strided_slice %44 {offsets = [0, 64], sizes = [8, 64], strides = [1, 1]} : vector<8x192xf32> to vector<8x64xf32>
    %49 = vector.extract_strided_slice %44 {offsets = [0, 128], sizes = [8, 64], strides = [1, 1]} : vector<8x192xf32> to vector<8x64xf32>
    %50 = arith.mulf %48, %10 : vector<8x64xf32>
    %51 = arith.mulf %47, %46 : vector<8x64xf32>
    %52 = arith.addf %50, %51 : vector<8x64xf32>
    %53 = math.tanh %52 : vector<8x64xf32>
    %54 = arith.mulf %49, %53 : vector<8x64xf32>
    %c1 = arith.constant 1 : index
    %c0_21 = arith.constant 0 : index
    %c0_22 = arith.constant 0 : index
    %55 = vector.load %arg1[%c1, %c0_21, %c0_22] : memref<8x8x256xf32, #tpu.memory_space<vmem>>, vector<1x8x256xf32>
    %56 = vector.shape_cast %55 : vector<1x8x256xf32> to vector<8x256xf32>
    %57 = arith.truncf %54 : vector<8x64xf32> to vector<8x64xbf16>
    %cst_23 = arith.constant dense<0.000000e+00> : vector<8x256xf32>
    %58 = tpu.matmul %57, %5, %cst_23 {dimension_numbers = #tpu.dot_dimension_numbers<[1], [0], [0], [1], [0, 0, 1, 1], [], []>} : vector<8x64xbf16>, vector<64x256xbf16>, vector<8x256xf32> -> vector<8x256xf32>
    %59 = vector.broadcast %6 : vector<1x256xf32> to vector<8x256xf32>
    %60 = arith.addf %58, %59 : vector<8x256xf32>
    %61 = arith.truncf %35 : vector<8x64xf32> to vector<8x64xbf16>
    %cst_24 = arith.constant dense<0.000000e+00> : vector<8x256xf32>
    %62 = tpu.matmul %61, %3, %cst_24 {dimension_numbers = #tpu.dot_dimension_numbers<[1], [0], [0], [1], [0, 0, 1, 1], [], []>} : vector<8x64xbf16>, vector<64x256xbf16>, vector<8x256xf32> -> vector<8x256xf32>
    %63 = arith.addf %56, %62 : vector<8x256xf32>
    %64 = vector.extract_strided_slice %63 {offsets = [0, 0], sizes = [8, 192], strides = [1, 1]} : vector<8x256xf32> to vector<8x192xf32>
    %65 = arith.negf %64 : vector<8x192xf32>
    %66 = math.exp %65 : vector<8x192xf32>
    %cst_25 = arith.constant 1.000000e+00 : f32
    %67 = vector.broadcast %cst_25 : f32 to vector<8x192xf32>
    %68 = arith.addf %67, %66 : vector<8x192xf32>
    %69 = arith.divf %67, %68 : vector<8x192xf32>
    %70 = vector.extract_strided_slice %63 {offsets = [0, 192], sizes = [8, 64], strides = [1, 1]} : vector<8x256xf32> to vector<8x64xf32>
    %71 = math.tanh %70 : vector<8x64xf32>
    %72 = vector.extract_strided_slice %69 {offsets = [0, 0], sizes = [8, 64], strides = [1, 1]} : vector<8x192xf32> to vector<8x64xf32>
    %73 = vector.extract_strided_slice %69 {offsets = [0, 64], sizes = [8, 64], strides = [1, 1]} : vector<8x192xf32> to vector<8x64xf32>
    %74 = vector.extract_strided_slice %69 {offsets = [0, 128], sizes = [8, 64], strides = [1, 1]} : vector<8x192xf32> to vector<8x64xf32>
    %75 = arith.mulf %73, %33 : vector<8x64xf32>
    %76 = arith.mulf %72, %71 : vector<8x64xf32>
    %77 = arith.addf %75, %76 : vector<8x64xf32>
    %78 = math.tanh %77 : vector<8x64xf32>
    %79 = arith.mulf %74, %78 : vector<8x64xf32>
    %80 = arith.truncf %79 : vector<8x64xf32> to vector<8x64xbf16>
    %cst_26 = arith.constant dense<0.000000e+00> : vector<8x256xf32>
    %81 = tpu.matmul %80, %4, %cst_26 {dimension_numbers = #tpu.dot_dimension_numbers<[1], [0], [0], [1], [0, 0, 1, 1], [], []>} : vector<8x64xbf16>, vector<64x256xbf16>, vector<8x256xf32> -> vector<8x256xf32>
    %82 = arith.addf %60, %81 : vector<8x256xf32>
    %83 = vector.extract_strided_slice %82 {offsets = [0, 0], sizes = [8, 192], strides = [1, 1]} : vector<8x256xf32> to vector<8x192xf32>
    %84 = arith.negf %83 : vector<8x192xf32>
    %85 = math.exp %84 : vector<8x192xf32>
    %cst_27 = arith.constant 1.000000e+00 : f32
    %86 = vector.broadcast %cst_27 : f32 to vector<8x192xf32>
    %87 = arith.addf %86, %85 : vector<8x192xf32>
    %88 = arith.divf %86, %87 : vector<8x192xf32>
    %89 = vector.extract_strided_slice %82 {offsets = [0, 192], sizes = [8, 64], strides = [1, 1]} : vector<8x256xf32> to vector<8x64xf32>
    %90 = math.tanh %89 : vector<8x64xf32>
    %91 = vector.extract_strided_slice %88 {offsets = [0, 0], sizes = [8, 64], strides = [1, 1]} : vector<8x192xf32> to vector<8x64xf32>
    %92 = vector.extract_strided_slice %88 {offsets = [0, 64], sizes = [8, 64], strides = [1, 1]} : vector<8x192xf32> to vector<8x64xf32>
    %93 = vector.extract_strided_slice %88 {offsets = [0, 128], sizes = [8, 64], strides = [1, 1]} : vector<8x192xf32> to vector<8x64xf32>
    %94 = arith.mulf %92, %52 : vector<8x64xf32>
    %95 = arith.mulf %91, %90 : vector<8x64xf32>
    %96 = arith.addf %94, %95 : vector<8x64xf32>
    %97 = math.tanh %96 : vector<8x64xf32>
    %98 = arith.mulf %93, %97 : vector<8x64xf32>
    %c2 = arith.constant 2 : index
    %c0_28 = arith.constant 0 : index
    %c0_29 = arith.constant 0 : index
    %99 = vector.load %arg1[%c2, %c0_28, %c0_29] : memref<8x8x256xf32, #tpu.memory_space<vmem>>, vector<1x8x256xf32>
    %100 = vector.shape_cast %99 : vector<1x8x256xf32> to vector<8x256xf32>
    %101 = arith.truncf %98 : vector<8x64xf32> to vector<8x64xbf16>
    %cst_30 = arith.constant dense<0.000000e+00> : vector<8x256xf32>
    %102 = tpu.matmul %101, %5, %cst_30 {dimension_numbers = #tpu.dot_dimension_numbers<[1], [0], [0], [1], [0, 0, 1, 1], [], []>} : vector<8x64xbf16>, vector<64x256xbf16>, vector<8x256xf32> -> vector<8x256xf32>
    %103 = vector.broadcast %6 : vector<1x256xf32> to vector<8x256xf32>
    %104 = arith.addf %102, %103 : vector<8x256xf32>
    %105 = arith.truncf %79 : vector<8x64xf32> to vector<8x64xbf16>
    %cst_31 = arith.constant dense<0.000000e+00> : vector<8x256xf32>
    %106 = tpu.matmul %105, %3, %cst_31 {dimension_numbers = #tpu.dot_dimension_numbers<[1], [0], [0], [1], [0, 0, 1, 1], [], []>} : vector<8x64xbf16>, vector<64x256xbf16>, vector<8x256xf32> -> vector<8x256xf32>
    %107 = arith.addf %100, %106 : vector<8x256xf32>
    %108 = vector.extract_strided_slice %107 {offsets = [0, 0], sizes = [8, 192], strides = [1, 1]} : vector<8x256xf32> to vector<8x192xf32>
    %109 = arith.negf %108 : vector<8x192xf32>
    %110 = math.exp %109 : vector<8x192xf32>
    %cst_32 = arith.constant 1.000000e+00 : f32
    %111 = vector.broadcast %cst_32 : f32 to vector<8x192xf32>
    %112 = arith.addf %111, %110 : vector<8x192xf32>
    %113 = arith.divf %111, %112 : vector<8x192xf32>
    %114 = vector.extract_strided_slice %107 {offsets = [0, 192], sizes = [8, 64], strides = [1, 1]} : vector<8x256xf32> to vector<8x64xf32>
    %115 = math.tanh %114 : vector<8x64xf32>
    %116 = vector.extract_strided_slice %113 {offsets = [0, 0], sizes = [8, 64], strides = [1, 1]} : vector<8x192xf32> to vector<8x64xf32>
    %117 = vector.extract_strided_slice %113 {offsets = [0, 64], sizes = [8, 64], strides = [1, 1]} : vector<8x192xf32> to vector<8x64xf32>
    %118 = vector.extract_strided_slice %113 {offsets = [0, 128], sizes = [8, 64], strides = [1, 1]} : vector<8x192xf32> to vector<8x64xf32>
    %119 = arith.mulf %117, %77 : vector<8x64xf32>
    %120 = arith.mulf %116, %115 : vector<8x64xf32>
    %121 = arith.addf %119, %120 : vector<8x64xf32>
    %122 = math.tanh %121 : vector<8x64xf32>
    %123 = arith.mulf %118, %122 : vector<8x64xf32>
    %124 = arith.truncf %123 : vector<8x64xf32> to vector<8x64xbf16>
    %cst_33 = arith.constant dense<0.000000e+00> : vector<8x256xf32>
    %125 = tpu.matmul %124, %4, %cst_33 {dimension_numbers = #tpu.dot_dimension_numbers<[1], [0], [0], [1], [0, 0, 1, 1], [], []>} : vector<8x64xbf16>, vector<64x256xbf16>, vector<8x256xf32> -> vector<8x256xf32>
    %126 = arith.addf %104, %125 : vector<8x256xf32>
    %127 = vector.extract_strided_slice %126 {offsets = [0, 0], sizes = [8, 192], strides = [1, 1]} : vector<8x256xf32> to vector<8x192xf32>
    %128 = arith.negf %127 : vector<8x192xf32>
    %129 = math.exp %128 : vector<8x192xf32>
    %cst_34 = arith.constant 1.000000e+00 : f32
    %130 = vector.broadcast %cst_34 : f32 to vector<8x192xf32>
    %131 = arith.addf %130, %129 : vector<8x192xf32>
    %132 = arith.divf %130, %131 : vector<8x192xf32>
    %133 = vector.extract_strided_slice %126 {offsets = [0, 192], sizes = [8, 64], strides = [1, 1]} : vector<8x256xf32> to vector<8x64xf32>
    %134 = math.tanh %133 : vector<8x64xf32>
    %135 = vector.extract_strided_slice %132 {offsets = [0, 0], sizes = [8, 64], strides = [1, 1]} : vector<8x192xf32> to vector<8x64xf32>
    %136 = vector.extract_strided_slice %132 {offsets = [0, 64], sizes = [8, 64], strides = [1, 1]} : vector<8x192xf32> to vector<8x64xf32>
    %137 = vector.extract_strided_slice %132 {offsets = [0, 128], sizes = [8, 64], strides = [1, 1]} : vector<8x192xf32> to vector<8x64xf32>
    %138 = arith.mulf %136, %96 : vector<8x64xf32>
    %139 = arith.mulf %135, %134 : vector<8x64xf32>
    %140 = arith.addf %138, %139 : vector<8x64xf32>
    %141 = math.tanh %140 : vector<8x64xf32>
    %142 = arith.mulf %137, %141 : vector<8x64xf32>
    %c3 = arith.constant 3 : index
    %c0_35 = arith.constant 0 : index
    %c0_36 = arith.constant 0 : index
    %143 = vector.load %arg1[%c3, %c0_35, %c0_36] : memref<8x8x256xf32, #tpu.memory_space<vmem>>, vector<1x8x256xf32>
    %144 = vector.shape_cast %143 : vector<1x8x256xf32> to vector<8x256xf32>
    %145 = arith.truncf %142 : vector<8x64xf32> to vector<8x64xbf16>
    %cst_37 = arith.constant dense<0.000000e+00> : vector<8x256xf32>
    %146 = tpu.matmul %145, %5, %cst_37 {dimension_numbers = #tpu.dot_dimension_numbers<[1], [0], [0], [1], [0, 0, 1, 1], [], []>} : vector<8x64xbf16>, vector<64x256xbf16>, vector<8x256xf32> -> vector<8x256xf32>
    %147 = vector.broadcast %6 : vector<1x256xf32> to vector<8x256xf32>
    %148 = arith.addf %146, %147 : vector<8x256xf32>
    %149 = arith.truncf %123 : vector<8x64xf32> to vector<8x64xbf16>
    %cst_38 = arith.constant dense<0.000000e+00> : vector<8x256xf32>
    %150 = tpu.matmul %149, %3, %cst_38 {dimension_numbers = #tpu.dot_dimension_numbers<[1], [0], [0], [1], [0, 0, 1, 1], [], []>} : vector<8x64xbf16>, vector<64x256xbf16>, vector<8x256xf32> -> vector<8x256xf32>
    %151 = arith.addf %144, %150 : vector<8x256xf32>
    %152 = vector.extract_strided_slice %151 {offsets = [0, 0], sizes = [8, 192], strides = [1, 1]} : vector<8x256xf32> to vector<8x192xf32>
    %153 = arith.negf %152 : vector<8x192xf32>
    %154 = math.exp %153 : vector<8x192xf32>
    %cst_39 = arith.constant 1.000000e+00 : f32
    %155 = vector.broadcast %cst_39 : f32 to vector<8x192xf32>
    %156 = arith.addf %155, %154 : vector<8x192xf32>
    %157 = arith.divf %155, %156 : vector<8x192xf32>
    %158 = vector.extract_strided_slice %151 {offsets = [0, 192], sizes = [8, 64], strides = [1, 1]} : vector<8x256xf32> to vector<8x64xf32>
    %159 = math.tanh %158 : vector<8x64xf32>
    %160 = vector.extract_strided_slice %157 {offsets = [0, 0], sizes = [8, 64], strides = [1, 1]} : vector<8x192xf32> to vector<8x64xf32>
    %161 = vector.extract_strided_slice %157 {offsets = [0, 64], sizes = [8, 64], strides = [1, 1]} : vector<8x192xf32> to vector<8x64xf32>
    %162 = vector.extract_strided_slice %157 {offsets = [0, 128], sizes = [8, 64], strides = [1, 1]} : vector<8x192xf32> to vector<8x64xf32>
    %163 = arith.mulf %161, %121 : vector<8x64xf32>
    %164 = arith.mulf %160, %159 : vector<8x64xf32>
    %165 = arith.addf %163, %164 : vector<8x64xf32>
    %166 = math.tanh %165 : vector<8x64xf32>
    %167 = arith.mulf %162, %166 : vector<8x64xf32>
    %168 = arith.truncf %167 : vector<8x64xf32> to vector<8x64xbf16>
    %cst_40 = arith.constant dense<0.000000e+00> : vector<8x256xf32>
    %169 = tpu.matmul %168, %4, %cst_40 {dimension_numbers = #tpu.dot_dimension_numbers<[1], [0], [0], [1], [0, 0, 1, 1], [], []>} : vector<8x64xbf16>, vector<64x256xbf16>, vector<8x256xf32> -> vector<8x256xf32>
    %170 = arith.addf %148, %169 : vector<8x256xf32>
    %171 = vector.extract_strided_slice %170 {offsets = [0, 0], sizes = [8, 192], strides = [1, 1]} : vector<8x256xf32> to vector<8x192xf32>
    %172 = arith.negf %171 : vector<8x192xf32>
    %173 = math.exp %172 : vector<8x192xf32>
    %cst_41 = arith.constant 1.000000e+00 : f32
    %174 = vector.broadcast %cst_41 : f32 to vector<8x192xf32>
    %175 = arith.addf %174, %173 : vector<8x192xf32>
    %176 = arith.divf %174, %175 : vector<8x192xf32>
    %177 = vector.extract_strided_slice %170 {offsets = [0, 192], sizes = [8, 64], strides = [1, 1]} : vector<8x256xf32> to vector<8x64xf32>
    %178 = math.tanh %177 : vector<8x64xf32>
    %179 = vector.extract_strided_slice %176 {offsets = [0, 0], sizes = [8, 64], strides = [1, 1]} : vector<8x192xf32> to vector<8x64xf32>
    %180 = vector.extract_strided_slice %176 {offsets = [0, 64], sizes = [8, 64], strides = [1, 1]} : vector<8x192xf32> to vector<8x64xf32>
    %181 = vector.extract_strided_slice %176 {offsets = [0, 128], sizes = [8, 64], strides = [1, 1]} : vector<8x192xf32> to vector<8x64xf32>
    %182 = arith.mulf %180, %140 : vector<8x64xf32>
    %183 = arith.mulf %179, %178 : vector<8x64xf32>
    %184 = arith.addf %182, %183 : vector<8x64xf32>
    %185 = math.tanh %184 : vector<8x64xf32>
    %186 = arith.mulf %181, %185 : vector<8x64xf32>
    %c4 = arith.constant 4 : index
    %c0_42 = arith.constant 0 : index
    %c0_43 = arith.constant 0 : index
    %187 = vector.load %arg1[%c4, %c0_42, %c0_43] : memref<8x8x256xf32, #tpu.memory_space<vmem>>, vector<1x8x256xf32>
    %188 = vector.shape_cast %187 : vector<1x8x256xf32> to vector<8x256xf32>
    %189 = arith.truncf %186 : vector<8x64xf32> to vector<8x64xbf16>
    %cst_44 = arith.constant dense<0.000000e+00> : vector<8x256xf32>
    %190 = tpu.matmul %189, %5, %cst_44 {dimension_numbers = #tpu.dot_dimension_numbers<[1], [0], [0], [1], [0, 0, 1, 1], [], []>} : vector<8x64xbf16>, vector<64x256xbf16>, vector<8x256xf32> -> vector<8x256xf32>
    %191 = vector.broadcast %6 : vector<1x256xf32> to vector<8x256xf32>
    %192 = arith.addf %190, %191 : vector<8x256xf32>
    %193 = arith.truncf %167 : vector<8x64xf32> to vector<8x64xbf16>
    %cst_45 = arith.constant dense<0.000000e+00> : vector<8x256xf32>
    %194 = tpu.matmul %193, %3, %cst_45 {dimension_numbers = #tpu.dot_dimension_numbers<[1], [0], [0], [1], [0, 0, 1, 1], [], []>} : vector<8x64xbf16>, vector<64x256xbf16>, vector<8x256xf32> -> vector<8x256xf32>
    %195 = arith.addf %188, %194 : vector<8x256xf32>
    %196 = vector.extract_strided_slice %195 {offsets = [0, 0], sizes = [8, 192], strides = [1, 1]} : vector<8x256xf32> to vector<8x192xf32>
    %197 = arith.negf %196 : vector<8x192xf32>
    %198 = math.exp %197 : vector<8x192xf32>
    %cst_46 = arith.constant 1.000000e+00 : f32
    %199 = vector.broadcast %cst_46 : f32 to vector<8x192xf32>
    %200 = arith.addf %199, %198 : vector<8x192xf32>
    %201 = arith.divf %199, %200 : vector<8x192xf32>
    %202 = vector.extract_strided_slice %195 {offsets = [0, 192], sizes = [8, 64], strides = [1, 1]} : vector<8x256xf32> to vector<8x64xf32>
    %203 = math.tanh %202 : vector<8x64xf32>
    %204 = vector.extract_strided_slice %201 {offsets = [0, 0], sizes = [8, 64], strides = [1, 1]} : vector<8x192xf32> to vector<8x64xf32>
    %205 = vector.extract_strided_slice %201 {offsets = [0, 64], sizes = [8, 64], strides = [1, 1]} : vector<8x192xf32> to vector<8x64xf32>
    %206 = vector.extract_strided_slice %201 {offsets = [0, 128], sizes = [8, 64], strides = [1, 1]} : vector<8x192xf32> to vector<8x64xf32>
    %207 = arith.mulf %205, %165 : vector<8x64xf32>
    %208 = arith.mulf %204, %203 : vector<8x64xf32>
    %209 = arith.addf %207, %208 : vector<8x64xf32>
    %210 = math.tanh %209 : vector<8x64xf32>
    %211 = arith.mulf %206, %210 : vector<8x64xf32>
    %212 = arith.truncf %211 : vector<8x64xf32> to vector<8x64xbf16>
    %cst_47 = arith.constant dense<0.000000e+00> : vector<8x256xf32>
    %213 = tpu.matmul %212, %4, %cst_47 {dimension_numbers = #tpu.dot_dimension_numbers<[1], [0], [0], [1], [0, 0, 1, 1], [], []>} : vector<8x64xbf16>, vector<64x256xbf16>, vector<8x256xf32> -> vector<8x256xf32>
    %214 = arith.addf %192, %213 : vector<8x256xf32>
    %215 = vector.extract_strided_slice %214 {offsets = [0, 0], sizes = [8, 192], strides = [1, 1]} : vector<8x256xf32> to vector<8x192xf32>
    %216 = arith.negf %215 : vector<8x192xf32>
    %217 = math.exp %216 : vector<8x192xf32>
    %cst_48 = arith.constant 1.000000e+00 : f32
    %218 = vector.broadcast %cst_48 : f32 to vector<8x192xf32>
    %219 = arith.addf %218, %217 : vector<8x192xf32>
    %220 = arith.divf %218, %219 : vector<8x192xf32>
    %221 = vector.extract_strided_slice %214 {offsets = [0, 192], sizes = [8, 64], strides = [1, 1]} : vector<8x256xf32> to vector<8x64xf32>
    %222 = math.tanh %221 : vector<8x64xf32>
    %223 = vector.extract_strided_slice %220 {offsets = [0, 0], sizes = [8, 64], strides = [1, 1]} : vector<8x192xf32> to vector<8x64xf32>
    %224 = vector.extract_strided_slice %220 {offsets = [0, 64], sizes = [8, 64], strides = [1, 1]} : vector<8x192xf32> to vector<8x64xf32>
    %225 = vector.extract_strided_slice %220 {offsets = [0, 128], sizes = [8, 64], strides = [1, 1]} : vector<8x192xf32> to vector<8x64xf32>
    %226 = arith.mulf %224, %184 : vector<8x64xf32>
    %227 = arith.mulf %223, %222 : vector<8x64xf32>
    %228 = arith.addf %226, %227 : vector<8x64xf32>
    %229 = math.tanh %228 : vector<8x64xf32>
    %230 = arith.mulf %225, %229 : vector<8x64xf32>
    %c5 = arith.constant 5 : index
    %c0_49 = arith.constant 0 : index
    %c0_50 = arith.constant 0 : index
    %231 = vector.load %arg1[%c5, %c0_49, %c0_50] : memref<8x8x256xf32, #tpu.memory_space<vmem>>, vector<1x8x256xf32>
    %232 = vector.shape_cast %231 : vector<1x8x256xf32> to vector<8x256xf32>
    %233 = arith.truncf %230 : vector<8x64xf32> to vector<8x64xbf16>
    %cst_51 = arith.constant dense<0.000000e+00> : vector<8x256xf32>
    %234 = tpu.matmul %233, %5, %cst_51 {dimension_numbers = #tpu.dot_dimension_numbers<[1], [0], [0], [1], [0, 0, 1, 1], [], []>} : vector<8x64xbf16>, vector<64x256xbf16>, vector<8x256xf32> -> vector<8x256xf32>
    %235 = vector.broadcast %6 : vector<1x256xf32> to vector<8x256xf32>
    %236 = arith.addf %234, %235 : vector<8x256xf32>
    %237 = arith.truncf %211 : vector<8x64xf32> to vector<8x64xbf16>
    %cst_52 = arith.constant dense<0.000000e+00> : vector<8x256xf32>
    %238 = tpu.matmul %237, %3, %cst_52 {dimension_numbers = #tpu.dot_dimension_numbers<[1], [0], [0], [1], [0, 0, 1, 1], [], []>} : vector<8x64xbf16>, vector<64x256xbf16>, vector<8x256xf32> -> vector<8x256xf32>
    %239 = arith.addf %232, %238 : vector<8x256xf32>
    %240 = vector.extract_strided_slice %239 {offsets = [0, 0], sizes = [8, 192], strides = [1, 1]} : vector<8x256xf32> to vector<8x192xf32>
    %241 = arith.negf %240 : vector<8x192xf32>
    %242 = math.exp %241 : vector<8x192xf32>
    %cst_53 = arith.constant 1.000000e+00 : f32
    %243 = vector.broadcast %cst_53 : f32 to vector<8x192xf32>
    %244 = arith.addf %243, %242 : vector<8x192xf32>
    %245 = arith.divf %243, %244 : vector<8x192xf32>
    %246 = vector.extract_strided_slice %239 {offsets = [0, 192], sizes = [8, 64], strides = [1, 1]} : vector<8x256xf32> to vector<8x64xf32>
    %247 = math.tanh %246 : vector<8x64xf32>
    %248 = vector.extract_strided_slice %245 {offsets = [0, 0], sizes = [8, 64], strides = [1, 1]} : vector<8x192xf32> to vector<8x64xf32>
    %249 = vector.extract_strided_slice %245 {offsets = [0, 64], sizes = [8, 64], strides = [1, 1]} : vector<8x192xf32> to vector<8x64xf32>
    %250 = vector.extract_strided_slice %245 {offsets = [0, 128], sizes = [8, 64], strides = [1, 1]} : vector<8x192xf32> to vector<8x64xf32>
    %251 = arith.mulf %249, %209 : vector<8x64xf32>
    %252 = arith.mulf %248, %247 : vector<8x64xf32>
    %253 = arith.addf %251, %252 : vector<8x64xf32>
    %254 = math.tanh %253 : vector<8x64xf32>
    %255 = arith.mulf %250, %254 : vector<8x64xf32>
    %256 = arith.truncf %255 : vector<8x64xf32> to vector<8x64xbf16>
    %cst_54 = arith.constant dense<0.000000e+00> : vector<8x256xf32>
    %257 = tpu.matmul %256, %4, %cst_54 {dimension_numbers = #tpu.dot_dimension_numbers<[1], [0], [0], [1], [0, 0, 1, 1], [], []>} : vector<8x64xbf16>, vector<64x256xbf16>, vector<8x256xf32> -> vector<8x256xf32>
    %258 = arith.addf %236, %257 : vector<8x256xf32>
    %259 = vector.extract_strided_slice %258 {offsets = [0, 0], sizes = [8, 192], strides = [1, 1]} : vector<8x256xf32> to vector<8x192xf32>
    %260 = arith.negf %259 : vector<8x192xf32>
    %261 = math.exp %260 : vector<8x192xf32>
    %cst_55 = arith.constant 1.000000e+00 : f32
    %262 = vector.broadcast %cst_55 : f32 to vector<8x192xf32>
    %263 = arith.addf %262, %261 : vector<8x192xf32>
    %264 = arith.divf %262, %263 : vector<8x192xf32>
    %265 = vector.extract_strided_slice %258 {offsets = [0, 192], sizes = [8, 64], strides = [1, 1]} : vector<8x256xf32> to vector<8x64xf32>
    %266 = math.tanh %265 : vector<8x64xf32>
    %267 = vector.extract_strided_slice %264 {offsets = [0, 0], sizes = [8, 64], strides = [1, 1]} : vector<8x192xf32> to vector<8x64xf32>
    %268 = vector.extract_strided_slice %264 {offsets = [0, 64], sizes = [8, 64], strides = [1, 1]} : vector<8x192xf32> to vector<8x64xf32>
    %269 = vector.extract_strided_slice %264 {offsets = [0, 128], sizes = [8, 64], strides = [1, 1]} : vector<8x192xf32> to vector<8x64xf32>
    %270 = arith.mulf %268, %228 : vector<8x64xf32>
    %271 = arith.mulf %267, %266 : vector<8x64xf32>
    %272 = arith.addf %270, %271 : vector<8x64xf32>
    %273 = math.tanh %272 : vector<8x64xf32>
    %274 = arith.mulf %269, %273 : vector<8x64xf32>
    %c6 = arith.constant 6 : index
    %c0_56 = arith.constant 0 : index
    %c0_57 = arith.constant 0 : index
    %275 = vector.load %arg1[%c6, %c0_56, %c0_57] : memref<8x8x256xf32, #tpu.memory_space<vmem>>, vector<1x8x256xf32>
    %276 = vector.shape_cast %275 : vector<1x8x256xf32> to vector<8x256xf32>
    %277 = arith.truncf %274 : vector<8x64xf32> to vector<8x64xbf16>
    %cst_58 = arith.constant dense<0.000000e+00> : vector<8x256xf32>
    %278 = tpu.matmul %277, %5, %cst_58 {dimension_numbers = #tpu.dot_dimension_numbers<[1], [0], [0], [1], [0, 0, 1, 1], [], []>} : vector<8x64xbf16>, vector<64x256xbf16>, vector<8x256xf32> -> vector<8x256xf32>
    %279 = vector.broadcast %6 : vector<1x256xf32> to vector<8x256xf32>
    %280 = arith.addf %278, %279 : vector<8x256xf32>
    %281 = arith.truncf %255 : vector<8x64xf32> to vector<8x64xbf16>
    %cst_59 = arith.constant dense<0.000000e+00> : vector<8x256xf32>
    %282 = tpu.matmul %281, %3, %cst_59 {dimension_numbers = #tpu.dot_dimension_numbers<[1], [0], [0], [1], [0, 0, 1, 1], [], []>} : vector<8x64xbf16>, vector<64x256xbf16>, vector<8x256xf32> -> vector<8x256xf32>
    %283 = arith.addf %276, %282 : vector<8x256xf32>
    %284 = vector.extract_strided_slice %283 {offsets = [0, 0], sizes = [8, 192], strides = [1, 1]} : vector<8x256xf32> to vector<8x192xf32>
    %285 = arith.negf %284 : vector<8x192xf32>
    %286 = math.exp %285 : vector<8x192xf32>
    %cst_60 = arith.constant 1.000000e+00 : f32
    %287 = vector.broadcast %cst_60 : f32 to vector<8x192xf32>
    %288 = arith.addf %287, %286 : vector<8x192xf32>
    %289 = arith.divf %287, %288 : vector<8x192xf32>
    %290 = vector.extract_strided_slice %283 {offsets = [0, 192], sizes = [8, 64], strides = [1, 1]} : vector<8x256xf32> to vector<8x64xf32>
    %291 = math.tanh %290 : vector<8x64xf32>
    %292 = vector.extract_strided_slice %289 {offsets = [0, 0], sizes = [8, 64], strides = [1, 1]} : vector<8x192xf32> to vector<8x64xf32>
    %293 = vector.extract_strided_slice %289 {offsets = [0, 64], sizes = [8, 64], strides = [1, 1]} : vector<8x192xf32> to vector<8x64xf32>
    %294 = vector.extract_strided_slice %289 {offsets = [0, 128], sizes = [8, 64], strides = [1, 1]} : vector<8x192xf32> to vector<8x64xf32>
    %295 = arith.mulf %293, %253 : vector<8x64xf32>
    %296 = arith.mulf %292, %291 : vector<8x64xf32>
    %297 = arith.addf %295, %296 : vector<8x64xf32>
    %298 = math.tanh %297 : vector<8x64xf32>
    %299 = arith.mulf %294, %298 : vector<8x64xf32>
    %300 = arith.truncf %299 : vector<8x64xf32> to vector<8x64xbf16>
    %cst_61 = arith.constant dense<0.000000e+00> : vector<8x256xf32>
    %301 = tpu.matmul %300, %4, %cst_61 {dimension_numbers = #tpu.dot_dimension_numbers<[1], [0], [0], [1], [0, 0, 1, 1], [], []>} : vector<8x64xbf16>, vector<64x256xbf16>, vector<8x256xf32> -> vector<8x256xf32>
    %302 = arith.addf %280, %301 : vector<8x256xf32>
    %303 = vector.extract_strided_slice %302 {offsets = [0, 0], sizes = [8, 192], strides = [1, 1]} : vector<8x256xf32> to vector<8x192xf32>
    %304 = arith.negf %303 : vector<8x192xf32>
    %305 = math.exp %304 : vector<8x192xf32>
    %cst_62 = arith.constant 1.000000e+00 : f32
    %306 = vector.broadcast %cst_62 : f32 to vector<8x192xf32>
    %307 = arith.addf %306, %305 : vector<8x192xf32>
    %308 = arith.divf %306, %307 : vector<8x192xf32>
    %309 = vector.extract_strided_slice %302 {offsets = [0, 192], sizes = [8, 64], strides = [1, 1]} : vector<8x256xf32> to vector<8x64xf32>
    %310 = math.tanh %309 : vector<8x64xf32>
    %311 = vector.extract_strided_slice %308 {offsets = [0, 0], sizes = [8, 64], strides = [1, 1]} : vector<8x192xf32> to vector<8x64xf32>
    %312 = vector.extract_strided_slice %308 {offsets = [0, 64], sizes = [8, 64], strides = [1, 1]} : vector<8x192xf32> to vector<8x64xf32>
    %313 = vector.extract_strided_slice %308 {offsets = [0, 128], sizes = [8, 64], strides = [1, 1]} : vector<8x192xf32> to vector<8x64xf32>
    %314 = arith.mulf %312, %272 : vector<8x64xf32>
    %315 = arith.mulf %311, %310 : vector<8x64xf32>
    %316 = arith.addf %314, %315 : vector<8x64xf32>
    %317 = math.tanh %316 : vector<8x64xf32>
    %318 = arith.mulf %313, %317 : vector<8x64xf32>
    %c7 = arith.constant 7 : index
    %c0_63 = arith.constant 0 : index
    %c0_64 = arith.constant 0 : index
    %319 = vector.load %arg1[%c7, %c0_63, %c0_64] : memref<8x8x256xf32, #tpu.memory_space<vmem>>, vector<1x8x256xf32>
    %320 = vector.shape_cast %319 : vector<1x8x256xf32> to vector<8x256xf32>
    %321 = arith.truncf %318 : vector<8x64xf32> to vector<8x64xbf16>
    %cst_65 = arith.constant dense<0.000000e+00> : vector<8x256xf32>
    %322 = tpu.matmul %321, %5, %cst_65 {dimension_numbers = #tpu.dot_dimension_numbers<[1], [0], [0], [1], [0, 0, 1, 1], [], []>} : vector<8x64xbf16>, vector<64x256xbf16>, vector<8x256xf32> -> vector<8x256xf32>
    %323 = vector.broadcast %6 : vector<1x256xf32> to vector<8x256xf32>
    %324 = arith.addf %322, %323 : vector<8x256xf32>
    %325 = arith.truncf %299 : vector<8x64xf32> to vector<8x64xbf16>
    %cst_66 = arith.constant dense<0.000000e+00> : vector<8x256xf32>
    %326 = tpu.matmul %325, %3, %cst_66 {dimension_numbers = #tpu.dot_dimension_numbers<[1], [0], [0], [1], [0, 0, 1, 1], [], []>} : vector<8x64xbf16>, vector<64x256xbf16>, vector<8x256xf32> -> vector<8x256xf32>
    %327 = arith.addf %320, %326 : vector<8x256xf32>
    %328 = vector.extract_strided_slice %327 {offsets = [0, 0], sizes = [8, 192], strides = [1, 1]} : vector<8x256xf32> to vector<8x192xf32>
    %329 = arith.negf %328 : vector<8x192xf32>
    %330 = math.exp %329 : vector<8x192xf32>
    %cst_67 = arith.constant 1.000000e+00 : f32
    %331 = vector.broadcast %cst_67 : f32 to vector<8x192xf32>
    %332 = arith.addf %331, %330 : vector<8x192xf32>
    %333 = arith.divf %331, %332 : vector<8x192xf32>
    %334 = vector.extract_strided_slice %327 {offsets = [0, 192], sizes = [8, 64], strides = [1, 1]} : vector<8x256xf32> to vector<8x64xf32>
    %335 = math.tanh %334 : vector<8x64xf32>
    %336 = vector.extract_strided_slice %333 {offsets = [0, 0], sizes = [8, 64], strides = [1, 1]} : vector<8x192xf32> to vector<8x64xf32>
    %337 = vector.extract_strided_slice %333 {offsets = [0, 64], sizes = [8, 64], strides = [1, 1]} : vector<8x192xf32> to vector<8x64xf32>
    %338 = vector.extract_strided_slice %333 {offsets = [0, 128], sizes = [8, 64], strides = [1, 1]} : vector<8x192xf32> to vector<8x64xf32>
    %339 = arith.mulf %337, %297 : vector<8x64xf32>
    %340 = arith.mulf %336, %335 : vector<8x64xf32>
    %341 = arith.addf %339, %340 : vector<8x64xf32>
    %342 = math.tanh %341 : vector<8x64xf32>
    %343 = arith.mulf %338, %342 : vector<8x64xf32>
    %344 = arith.truncf %343 : vector<8x64xf32> to vector<8x64xbf16>
    %cst_68 = arith.constant dense<0.000000e+00> : vector<8x256xf32>
    %345 = tpu.matmul %344, %4, %cst_68 {dimension_numbers = #tpu.dot_dimension_numbers<[1], [0], [0], [1], [0, 0, 1, 1], [], []>} : vector<8x64xbf16>, vector<64x256xbf16>, vector<8x256xf32> -> vector<8x256xf32>
    %346 = arith.addf %324, %345 : vector<8x256xf32>
    %347 = vector.extract_strided_slice %346 {offsets = [0, 0], sizes = [8, 192], strides = [1, 1]} : vector<8x256xf32> to vector<8x192xf32>
    %348 = arith.negf %347 : vector<8x192xf32>
    %349 = math.exp %348 : vector<8x192xf32>
    %cst_69 = arith.constant 1.000000e+00 : f32
    %350 = vector.broadcast %cst_69 : f32 to vector<8x192xf32>
    %351 = arith.addf %350, %349 : vector<8x192xf32>
    %352 = arith.divf %350, %351 : vector<8x192xf32>
    %353 = vector.extract_strided_slice %346 {offsets = [0, 192], sizes = [8, 64], strides = [1, 1]} : vector<8x256xf32> to vector<8x64xf32>
    %354 = math.tanh %353 : vector<8x64xf32>
    %355 = vector.extract_strided_slice %352 {offsets = [0, 0], sizes = [8, 64], strides = [1, 1]} : vector<8x192xf32> to vector<8x64xf32>
    %356 = vector.extract_strided_slice %352 {offsets = [0, 64], sizes = [8, 64], strides = [1, 1]} : vector<8x192xf32> to vector<8x64xf32>
    %357 = vector.extract_strided_slice %352 {offsets = [0, 128], sizes = [8, 64], strides = [1, 1]} : vector<8x192xf32> to vector<8x64xf32>
    %358 = arith.mulf %356, %316 : vector<8x64xf32>
    %359 = arith.mulf %355, %354 : vector<8x64xf32>
    %360 = arith.addf %358, %359 : vector<8x64xf32>
    %361 = math.tanh %360 : vector<8x64xf32>
    %362 = arith.mulf %357, %361 : vector<8x64xf32>
    %c0_70 = arith.constant 0 : index
    %c0_71 = arith.constant 0 : index
    %363 = vector.load %arg11[%c0_70, %c0_71] : memref<8x64xf32, #tpu.memory_space<vmem>>, vector<8x64xf32>
    tpu.vector_store %arg11[%c0_70, %c0_71], %343 {strides = array<i32>} : memref<8x64xf32, #tpu.memory_space<vmem>>, vector<8x64xf32>,
    %c0_72 = arith.constant 0 : index
    %c0_73 = arith.constant 0 : index
    %364 = vector.load %arg12[%c0_72, %c0_73] : memref<8x64xf32, #tpu.memory_space<vmem>>, vector<8x64xf32>
    tpu.vector_store %arg12[%c0_72, %c0_73], %341 {strides = array<i32>} : memref<8x64xf32, #tpu.memory_space<vmem>>, vector<8x64xf32>,
    %c0_74 = arith.constant 0 : index
    %c0_75 = arith.constant 0 : index
    %365 = vector.load %arg13[%c0_74, %c0_75] : memref<8x64xf32, #tpu.memory_space<vmem>>, vector<8x64xf32>
    tpu.vector_store %arg13[%c0_74, %c0_75], %362 {strides = array<i32>} : memref<8x64xf32, #tpu.memory_space<vmem>>, vector<8x64xf32>,
    %c0_76 = arith.constant 0 : index
    %c0_77 = arith.constant 0 : index
    %366 = vector.load %arg14[%c0_76, %c0_77] : memref<8x64xf32, #tpu.memory_space<vmem>>, vector<8x64xf32>
    tpu.vector_store %arg14[%c0_76, %c0_77], %360 {strides = array<i32>} : memref<8x64xf32, #tpu.memory_space<vmem>>, vector<8x64xf32>,
    %c0_i32_78 = arith.constant 0 : i32
    %367 = arith.cmpi eq, %arg0, %c0_i32_78 : i32
    %368 = arith.extui %367 : i1 to i32
    %c0_i32_79 = arith.constant 0 : i32
    %369 = arith.cmpi ne, %368, %c0_i32_79 : i32
    scf.if %369 {
      %c0_80 = arith.constant 0 : index
      %c0_81 = arith.constant 0 : index
      %370 = vector.load %arg4[%c0_80, %c0_81] : memref<64x32xf32, #tpu.memory_space<vmem>>, vector<64x32xf32>
      %cst_82 = arith.constant dense<0.000000e+00> : vector<8x32xf32>
      %371 = tpu.matmul %362, %370, %cst_82 {dimension_numbers = #tpu.dot_dimension_numbers<[1], [0], [0], [1], [0, 0, 1, 1], [], []>} : vector<8x64xf32>, vector<64x32xf32>, vector<8x32xf32> -> vector<8x32xf32>
      %c0_83 = arith.constant 0 : index
      %c0_84 = arith.constant 0 : index
      %372 = vector.load %arg5[%c0_83, %c0_84] : memref<1x32xf32, #tpu.memory_space<vmem>>, vector<1x32xf32>
      %373 = vector.broadcast %372 : vector<1x32xf32> to vector<8x32xf32>
      %374 = arith.addf %371, %373 : vector<8x32xf32>
      %cst_85 = arith.constant 0.000000e+00 : f32
      %375 = vector.broadcast %cst_85 : f32 to vector<8x32xf32>
      %376 = arith.maximumf %374, %375 : vector<8x32xf32>
      %c0_86 = arith.constant 0 : index
      %c0_87 = arith.constant 0 : index
      %377 = vector.load %arg6[%c0_86, %c0_87] : memref<32x16xf32, #tpu.memory_space<vmem>>, vector<32x16xf32>
      %cst_88 = arith.constant dense<0.000000e+00> : vector<8x16xf32>
      %378 = tpu.matmul %376, %377, %cst_88 {dimension_numbers = #tpu.dot_dimension_numbers<[1], [0], [0], [1], [0, 0, 1, 1], [], []>} : vector<8x32xf32>, vector<32x16xf32>, vector<8x16xf32> -> vector<8x16xf32>
      %c0_89 = arith.constant 0 : index
      %c0_90 = arith.constant 0 : index
      %379 = vector.load %arg7[%c0_89, %c0_90] : memref<1x16xf32, #tpu.memory_space<vmem>>, vector<1x16xf32>
      %380 = vector.broadcast %379 : vector<1x16xf32> to vector<8x16xf32>
      %381 = arith.addf %378, %380 : vector<8x16xf32>
      %cst_91 = arith.constant 0.000000e+00 : f32
      %382 = vector.broadcast %cst_91 : f32 to vector<8x16xf32>
      %383 = arith.maximumf %381, %382 : vector<8x16xf32>
      %c0_92 = arith.constant 0 : index
      %c0_93 = arith.constant 0 : index
      %384 = vector.load %arg8[%c0_92, %c0_93] : memref<16x1xf32, #tpu.memory_space<vmem>>, vector<16x1xf32>
      %cst_94 = arith.constant dense<0.000000e+00> : vector<8x1xf32>
      %385 = tpu.matmul %383, %384, %cst_94 {dimension_numbers = #tpu.dot_dimension_numbers<[1], [0], [0], [1], [0, 0, 1, 1], [], []>} : vector<8x16xf32>, vector<16x1xf32>, vector<8x1xf32> -> vector<8x1xf32>
      %c0_95 = arith.constant 0 : index
      %c0_96 = arith.constant 0 : index
      %386 = vector.load %arg9[%c0_95, %c0_96] : memref<1x1xf32, #tpu.memory_space<vmem>>, vector<1x1xf32>
      %387 = vector.broadcast %386 : vector<1x1xf32> to vector<8x1xf32>
      %388 = arith.addf %385, %387 : vector<8x1xf32>
      %389 = arith.negf %388 : vector<8x1xf32>
      %390 = math.exp %389 : vector<8x1xf32>
      %cst_97 = arith.constant 1.000000e+00 : f32
      %391 = vector.broadcast %cst_97 : f32 to vector<8x1xf32>
      %392 = arith.addf %391, %390 : vector<8x1xf32>
      %393 = arith.divf %391, %392 : vector<8x1xf32>
      %c0_98 = arith.constant 0 : index
      %c0_99 = arith.constant 0 : index
      %394 = vector.load %arg10[%c0_98, %c0_99] : memref<8x1xf32, #tpu.memory_space<vmem>>, vector<8x1xf32>
      tpu.vector_store %arg10[%c0_98, %c0_99], %393 {strides = array<i32>} : memref<8x1xf32, #tpu.memory_space<vmem>>, vector<8x1xf32>,
    } else {
    }
    return
  }
  func.func @transform_0(%arg0: i32) -> (i32, i32, i32) {
    %c0_i32 = arith.constant 0 : i32
    %c0_i32_0 = arith.constant 0 : i32
    %c0_i32_1 = arith.constant 0 : i32
    return %arg0, %c0_i32, %c0_i32_0 : i32, i32, i32
  }
  func.func @transform_1(%arg0: i32) -> (i32, i32) {
    %c0_i32 = arith.constant 0 : i32
    %c0_i32_0 = arith.constant 0 : i32
    %c0_i32_1 = arith.constant 0 : i32
    return %c0_i32, %c0_i32_0 : i32, i32
  }
  func.func @transform_2(%arg0: i32) -> (i32, i32) {
    %c0_i32 = arith.constant 0 : i32
    %c0_i32_0 = arith.constant 0 : i32
    %c0_i32_1 = arith.constant 0 : i32
    return %c0_i32, %c0_i32_0 : i32, i32
  }
  func.func @transform_3(%arg0: i32) -> (i32, i32) {
    %c0_i32 = arith.constant 0 : i32
    %c0_i32_0 = arith.constant 0 : i32
    %c0_i32_1 = arith.constant 0 : i32
    return %c0_i32, %c0_i32_0 : i32, i32
  }
  func.func @transform_4(%arg0: i32) -> (i32, i32) {
    %c0_i32 = arith.constant 0 : i32
    %c0_i32_0 = arith.constant 0 : i32
    %c0_i32_1 = arith.constant 0 : i32
    return %c0_i32, %c0_i32_0 : i32, i32
  }
  func.func @transform_5(%arg0: i32) -> (i32, i32) {
    %c0_i32 = arith.constant 0 : i32
    %c0_i32_0 = arith.constant 0 : i32
    %c0_i32_1 = arith.constant 0 : i32
    return %c0_i32, %c0_i32_0 : i32, i32
  }
  func.func @transform_6(%arg0: i32) -> (i32, i32) {
    %c0_i32 = arith.constant 0 : i32
    %c0_i32_0 = arith.constant 0 : i32
    %c0_i32_1 = arith.constant 0 : i32
    return %c0_i32, %c0_i32_0 : i32, i32
  }
  func.func @transform_7(%arg0: i32) -> (i32, i32) {
    %c0_i32 = arith.constant 0 : i32
    %c0_i32_0 = arith.constant 0 : i32
    %c0_i32_1 = arith.constant 0 : i32
    return %c0_i32, %c0_i32_0 : i32, i32
  }
  func.func @transform_8(%arg0: i32) -> (i32, i32) {
    %c0_i32 = arith.constant 0 : i32
    %c0_i32_0 = arith.constant 0 : i32
    %c0_i32_1 = arith.constant 0 : i32
    return %c0_i32, %c0_i32_0 : i32, i32
  }
  func.func @transform_9(%arg0: i32) -> (i32, i32) {
    %c0_i32 = arith.constant 0 : i32
    %c0_i32_0 = arith.constant 0 : i32
    %c0_i32_1 = arith.constant 0 : i32
    return %c0_i32, %c0_i32_0 : i32, i32
  }
}

</mosaic_0001>

<bundles_post_ra>
// kernel: tpu_custom_call.1
= control target key start
LH: loop header
LB: loop body
LE: loop exit
PB: predicated region body
PF: predicated region fallthrough
CT: control target
= control target key end

     0   :  { %s3179_s0 = inlined_call_operand.vmem [shape: f32[8,8,256], index: 0, kind: input, shape index: {}]   ;;  %s3180_s1 = inlined_call_operand.hbm [shape: bf16[64,768], index: 1, kind: input, shape index: {}]   ;;  %s3181_s2 = inlined_call_operand.vmem [shape: f32[1,256], index: 2, kind: input, shape index: {}]   ;;  %s3182_s3 = inlined_call_operand.vmem [shape: f32[64,32], index: 3, kind: input, shape index: {}]   ;;  %s3183_s4 = inlined_call_operand.vmem [shape: f32[1,32], index: 4, kind: input, shape index: {}]   ;;  %s3184_s5 = inlined_call_operand.vmem [shape: f32[32,16], index: 5, kind: input, shape index: {}]   ;;  %s3185_s6 = inlined_call_operand.vmem [shape: f32[1,16], index: 6, kind: input, shape index: {}]   ;;  %s3186_s7 = inlined_call_operand.vmem [shape: f32[16,1], index: 7, kind: input, shape index: {}]   ;;  %s3187_s8 = inlined_call_operand.<no memory space> [shape: f32[1,1], index: 8, kind: input, shape index: {}]   ;;  %s3188_s9 = inlined_call_operand.vmem [shape: f32[8,1], index: 9, kind: output, shape index: {}]  }
   0x1   :  { %v14_v0 = vstv %s3187_s8 }
   0x2   :  { %15 = vst [vmem:[#allocation6] sm:$0x1] %v14_v0 }
   0x3   :  { %16 = vsyncpa [#allocation8], 0  ;;  %s2540_s11 = smov [#allocation7]  }
   0x4   :  { %s24_s12 = sshll.u32 %s2540_s11, 4  ;;  %s25_s12 = int_to_ptr.vmem [resolvable:$true] %s24_s12 }
   0x5   :  { %s2526_s13 = scalar_lea.vmem %s25_s12, 3072  ;;  %p2531_p1 = scmp.lt.s32.totalorder %s25_s12, %s25_s12 }
   0x6   :  { %p2527_p0 = scmp.ne.s32.totalorder %s25_s12, %s2526_s13  ;;  %p2532_p2 = scmp.lt.s32.totalorder %s2526_s13, %s2526_s13 }
   0x8   :  { %p2533_p3 = por %p2532_p2, %p2531_p1 }
   0xa   :  { %p2534_p4 = pnand %p2533_p3, %p2527_p0 }
   0xc   :  { %2537 = shalt.err (!%p2534_p4)
}
   0xd   :  { %s2541_s14 = smov 384   ;;  %s2542_s15 = smov 24  }
   0xe   :  { %30 = dma.hbm_to_vmem [thread:$0]  %s3180_s1, 3072, %s25_s12, [#allocation8], %s2541_s14, %s2541_s14, %s2542_s15  }
   0xf   :  { %2538 = dma.done.wait [#allocation8], 3072  }
  0x10   :  { %2539 = vsyncadd [#allocation8], 4294964224  ;;  %vm53_vm0 = vcmask 523264   ;;  %v2543_v1 = vmov 0   ;;  %v2544_v2 = vmov 0.0   ;;  %v88_v14 = vld [vmem:[%s3179_s0 + $0x8] sm:$0xff]  ;;  %v91_v52 = vlaneseq }
  0x11   :  { %262 = vmatprep.mubr.bf16.mxu1 %v2543_v1  ;;  %54 = vst.msk [vmem:[#allocation2] sm:$0xff] %vm53_vm0, %v2544_v2  ;;  %55 = vst.msk [vmem:[#allocation3] sm:$0xff] %vm53_vm0, %v2544_v2  ;;  %177 = vmatprep.mubr.bf16.mxu0 %v2543_v1  ;;  %v2613_v3 = vld [vmem:[#allocation7 + $0x94] ss:$24 sps:$4 sm:$0xff]   ;;  %v2615_v4 = vld [vmem:[#allocation7 + $0x90] ss:$24 sps:$4 sm:$0xff]  }
  0x12   :  { %56 = vst.msk [vmem:[#allocation4] sm:$0xff] %vm53_vm0, %v2544_v2  ;;  %57 = vst.msk [vmem:[#allocation5] sm:$0xff] %vm53_vm0, %v2544_v2  ;;  %238 = vmatprep.subr.bf16.mxu1 %v2613_v3  ;;  %v2618_v5 = vld [vmem:[#allocation7 + $0x64] ss:$24 sps:$4 sm:$0xff]   ;;  %v2621_v6 = vld [vmem:[#allocation7 + $0x60] ss:$24 sps:$4 sm:$0xff]  }
  0x13   :  { %239 = vmatpush1.bf16.msra.mxu1 %v2615_v4  ;;  %v2624_v7 = vld [vmem:[#allocation7 + $0x34] ss:$24 sps:$4 sm:$0xff]   ;;  %v2626_v8 = vld [vmem:[#allocation7 + $0x30] ss:$24 sps:$4 sm:$0xff]   ;;  %v2628_v9 = vld [vmem:[#allocation7 + $0x4] ss:$24 sps:$4 sm:$0xff]  }
  0x14   :  { %240 = vmatprep.subr.bf16.mxu1 %v2618_v5  ;;  %v2633_v10 = vld [vmem:[#allocation7] ss:$24 sps:$4 sm:$0xff]   ;;  %s2545_s18 = smov 64   ;;  %v2651_v29 = vld [vmem:[#allocation7 + $0xa4] ss:$24 sps:$4 sm:$0xff]   ;;  %v92_v53 = vshrl.u32 %v91_v52, 7 }
  0x15   :  { %v87_v21 = vld [vmem:[%s3179_s0] sm:$0xff]  ;;  %v2655_v31 = vld [vmem:[#allocation7 + $0x74] ss:$24 sps:$4 sm:$0xff]   ;;  %153 = vmatprep.subr.bf16.mxu0 %v2651_v29  ;;  %v2660_v32 = vld [vmem:[#allocation7 + $0x70] ss:$24 sps:$4 sm:$0xff]   ;;  %vm2546_vm1 = vmmov 0  }
  0x16   :  { %v2653_v30 = vld [vmem:[#allocation7 + $0xa0] ss:$24 sps:$4 sm:$0xff]   ;;  %v2664_v33 = vld [vmem:[#allocation7 + $0x44] ss:$24 sps:$4 sm:$0xff]   ;;  %v2672_v35 = vld [vmem:[#allocation7 + $0x14] ss:$24 sps:$4 sm:$0xff]  }
  0x17   :  { %241 = vmatpush1.bf16.msra.mxu1 %v2621_v6  ;;  %154 = vmatpush1.bf16.msra.mxu0 %v2653_v30  ;;  %v2668_v34 = vld [vmem:[#allocation7 + $0x40] ss:$24 sps:$4 sm:$0xff]   ;;  %v2676_v36 = vld [vmem:[#allocation7 + $0x10] ss:$24 sps:$4 sm:$0xff]   ;;  %v2680_v38 = vld [vmem:[#allocation7 + $0x9c] ss:$24 sps:$4 sm:$0xff]  }
  0x18   :  { %242 = vmatprep.subr.bf16.mxu1 %v2624_v7  ;;  %v83_v11 = vld [vmem:[#allocation2] sm:$0xff]  ;;  %v84_v20 = vld [vmem:[#allocation3] sm:$0xff]  ;;  %155 = vmatprep.subr.bf16.mxu0 %v2655_v31  ;;  %v2684_v40 = vld [vmem:[#allocation7 + $0x98] ss:$24 sps:$4 sm:$0xff]   ;;  %v93_v55 = vsub.s32 0, %v92_v53  ;;  %vm1929_vm2 = vcmask 261120  }
  0x19   :  { %v186_v12 = vpack.c.bf16 %v83_v11, %v83_v11  ;;  %v85_v37 = vld [vmem:[#allocation4] sm:$0xff]  ;;  %v2693_v42 = vld [vmem:[#allocation7 + $0x68] ss:$24 sps:$4 sm:$0xff]   ;;  %vm2013_vm3 = vcmask 130048   ;;  %vm2093_vm4 = vcmask 7168  }
  0x1a   :  { %v89_v39 = vpack.c.bf16 %v85_v37, %v85_v37  ;;  %v2688_v41 = vld [vmem:[#allocation7 + $0x6c] ss:$24 sps:$4 sm:$0xff]   ;;  %v2697_v43 = vld [vmem:[#allocation7 + $0x3c] ss:$24 sps:$4 sm:$0xff]   ;;  %v2700_v44 = vld [vmem:[#allocation7 + $0x38] ss:$24 sps:$4 sm:$0xff]  }
  0x1b   :  { %243 = vmatpush1.bf16.msra.mxu1 %v2626_v8  ;;  %156 = vmatpush1.bf16.msra.mxu0 %v2660_v32  ;;  %v2703_v45 = vld [vmem:[#allocation7 + $0xc] ss:$24 sps:$4 sm:$0xff]   ;;  %v2709_v50 = vld [vmem:[#allocation7 + $0x8] ss:$24 sps:$4 sm:$0xff]  }
  0x1c   :  { %244 = vmatprep.subr.bf16.mxu1 %v2628_v9  ;;  %157 = vmatprep.subr.bf16.mxu0 %v2664_v33  ;;  %v82_v54 = vld [vmem:[%s3181_s2] sm:$0x3] }
  0x1d   :  { %v2718_v56 = vrot.slane %v82_v54, %v93_v55 }
  0x1f   :  { %245 = vmatpush1.bf16.msra.mxu1 %v2633_v10  ;;  %158 = vmatpush1.bf16.msra.mxu0 %v2668_v34 }
  0x20   :  { %443 = vmatprep.subr.bf16.mxu1 %v2651_v29  ;;  %159 = vmatprep.subr.bf16.mxu0 %v2672_v35 }
  0x22   :  { %2117 = vmatmul.mubr.msk.bf16.vlgmr.msra.gmra.mxu1 %vm53_vm0, %v186_v12 }
  0x23   :  { %467 = vmatprep.mubr.bf16.mxu1 %v2543_v1  ;;  %444 = vmatpush1.bf16.msra.mxu1 %v2653_v30 }
  0x24   :  { %445 = vmatprep.subr.bf16.mxu1 %v2655_v31  ;;  %160 = vmatpush1.bf16.msra.mxu0 %v2676_v36 }
  0x25   :  { %359 = vmatprep.subr.bf16.mxu0 %v2680_v38 }
  0x27   :  { %446 = vmatpush1.bf16.msra.mxu1 %v2660_v32  ;;  %2108 = vmatmul.mubr.msk.bf16.vlgmr.msra.gmra.mxu0 %vm53_vm0, %v89_v39  ;;  %v86_v39 = vld [vmem:[#allocation5] sm:$0xff] }
  0x28   :  { %447 = vmatprep.subr.bf16.mxu1 %v2664_v33  ;;  %360 = vmatpush1.bf16.msra.mxu0 %v2684_v40 }
  0x29   :  { %383 = vmatprep.mubr.bf16.mxu0 %v2543_v1  ;;  %361 = vmatprep.subr.bf16.mxu0 %v2688_v41 }
  0x2b   :  { %448 = vmatpush1.bf16.msra.mxu1 %v2668_v34 }
  0x2c   :  { %449 = vmatprep.subr.bf16.mxu1 %v2672_v35  ;;  %362 = vmatpush1.bf16.msra.mxu0 %v2693_v42 }
  0x2d   :  { %363 = vmatprep.subr.bf16.mxu0 %v2697_v43 }
  0x2f   :  { %450 = vmatpush1.bf16.msra.mxu1 %v2676_v36 }
  0x30   :  { %561 = vmatprep.subr.bf16.mxu1 %v2680_v38  ;;  %364 = vmatpush1.bf16.msra.mxu0 %v2700_v44 }
  0x31   :  { %365 = vmatprep.subr.bf16.mxu0 %v2703_v45 }
  0x34   :  { %366 = vmatpush1.bf16.msra.mxu0 %v2709_v50 }
  0x35   :  { %484 = vmatprep.subr.bf16.mxu0 %v2613_v3 }
  0xe2   :  { %v264_v13 = vpop.f32.mrf.mxu1 }
  0xe3   :  { %v271_v22 = vadd.f32 %v264_v13, %v87_v21 }
  0xe4   :  { %v266_v15 = vpop.f32.mrf.mxu1 }
  0xe5   :  { %v2642_v16 = vadd.f32 %v266_v15, %v88_v14  ;;  %v2118_v23 = vmul.f32 -1.442695, %v271_v22  ;;  %v97_v14 = vsub.s32 1, %v92_v53 }
  0xe6   :  { %v268_v17 = vpop.f32.mrf.mxu1 }
  0xe7   :  { %2298 = vtanh.f32 %v2642_v16  ;;  %v2119_v57 = vmul.f32 -1.442695, %v2642_v16  ;;  %v179_v58 = vpop.f32.mrf.mxu0  ;;  %v2741_v15 = vrot.slane %v82_v54, %v97_v14 }
  0xe8   :  { %v269_v18 = vpop.f32.mrf.mxu1  ;;  %2300 = vpow2.f32 %v2118_v23  ;;  %v180_v16 = vadd.f32 %v179_v58, %v2718_v56 }
  0xe9   :  { %v181_v59 = vpop.f32.mrf.mxu0 }
  0xea   :  { %v182_v18 = vadd.f32 %v181_v59, %v2741_v15 }
  0xeb   :  { %v183_v60 = vpop.f32.mrf.mxu0 }
  0xed   :  { %v184_v61 = vpop.f32.mrf.mxu0 }
  0xf4   :  { %v2299_v19 = vpop.eup %2298 }
  0xf5   :  { %292 = vrot.lane.b32.xlu0 %v2299_v19, %s2545_s18  ;;  %v2301_v24 = vpop.eup %2300 }
  0xf6   :  { %v279_v25 = vadd.f32 1.0, %v2301_v24 }
  0xf8   :  { %2302 = vrcp.f32 %v279_v25  ;;  %v2132_v25 = vld [vmem:[%s3179_s0 + $0x18] sm:$0xff] }
  0xf9   :  { %287 = vrot.lane.b32.xlu0 %v84_v20, %s2545_s18 }
 0x105   :  { %v2303_v26 = vpop.eup %2302 }
 0x167   :  { %v293_v27 = vpop.permute.xlu0 %292 }
 0x168   :  { %v295_v28 = vmul.f32 %v2303_v26, %v293_v27 }
 0x16a   :  { %297 = vrot.lane.b32.xlu1 %v295_v28, %s2545_s18 }
 0x16b   :  { %v288_v46 = vpop.permute.xlu0 %287 }
 0x16c   :  { %v290_v47 = vmul.f32 %v2303_v26, %v288_v46 }
 0x1dc   :  { %v298_v48 = vpop.permute.xlu1 %297 }
 0x1dd   :  { %v2707_v49 = vadd.f32 %v298_v48, %v290_v47 }
 0x1df   :  { %2304 = vtanh.f32 %v2707_v49 }
 0x1e0   :  { %2306 = vpow2.f32 %v2119_v57 }
 0x1ec   :  { %v2305_v51 = vpop.eup %2304 }
 0x1ed   :  { %303 = vrot.lane.b32.xlu1 %v2305_v51, %s2545_s18  ;;  %v2307_v62 = vpop.eup %2306  ;;  %v2131_v51 = vld [vmem:[%s3179_s0 + $0x10] sm:$0xff] }
 0x1ee   :  { %v280_v63 = vadd.f32 1.0, %v2307_v62 }
 0x1f0   :  { %2308 = vrcp.f32 %v280_v63 }
 0x1fd   :  { %v2309_v0 = vpop.eup %2308 }
 0x25f   :  { %v304_v11 = vpop.permute.xlu1 %303 }
 0x260   :  { %v306_v12 = vmul.f32 %v2309_v0, %v304_v11 }
 0x262   :  { %v307_v13 = vpack.c.bf16 %v306_v12, %v306_v12 }
 0x264   :  { %2128 = vmatmul.mubr.msk.bf16.vlgmr.msra.gmra.mxu0 %vm53_vm0, %v307_v13 }
 0x265   :  { %485 = vmatpush1.bf16.msra.mxu0 %v2615_v4  ;;  %508 = vmatprep.mubr.bf16.mxu0 %v2543_v1 }
 0x266   :  { %486 = vmatprep.subr.bf16.mxu0 %v2618_v5 }
 0x269   :  { %487 = vmatpush1.bf16.msra.mxu0 %v2621_v6 }
 0x26a   :  { %488 = vmatprep.subr.bf16.mxu0 %v2624_v7 }
 0x26d   :  { %489 = vmatpush1.bf16.msra.mxu0 %v2626_v8 }
 0x26e   :  { %490 = vmatprep.subr.bf16.mxu0 %v2628_v9 }
 0x271   :  { %491 = vmatpush1.bf16.msra.mxu0 %v2633_v10 }
 0x272   :  { %641 = vmatprep.subr.bf16.mxu0 %v2651_v29 }
 0x274   :  { %2134 = vmatmul.mubr.msk.bf16.vlgmr.msra.gmra.mxu0 %vm53_vm0, %v307_v13 }
 0x275   :  { %642 = vmatpush1.bf16.msra.mxu0 %v2653_v30  ;;  %665 = vmatprep.mubr.bf16.mxu0 %v2543_v1 }
 0x276   :  { %643 = vmatprep.subr.bf16.mxu0 %v2655_v31 }
 0x279   :  { %644 = vmatpush1.bf16.msra.mxu0 %v2660_v32 }
 0x27a   :  { %645 = vmatprep.subr.bf16.mxu0 %v2664_v33 }
 0x27d   :  { %646 = vmatpush1.bf16.msra.mxu0 %v2668_v34 }
 0x27e   :  { %647 = vmatprep.subr.bf16.mxu0 %v2672_v35 }
 0x281   :  { %648 = vmatpush1.bf16.msra.mxu0 %v2676_v36 }
 0x282   :  { %759 = vmatprep.subr.bf16.mxu0 %v2680_v38 }
 0x324   :  { %v385_v17 = vpop.f32.mrf.mxu0 }
 0x325   :  { %v392_v19 = vadd.f32 %v385_v17, %v180_v16 }
 0x326   :  { %v387_v20 = vpop.f32.mrf.mxu0 }
 0x327   :  { %v393_v21 = vadd.f32 %v387_v20, %v182_v18  ;;  %v2129_v48 = vmul.f32 -1.442695, %v392_v19 }
 0x328   :  { %v389_v22 = vpop.f32.mrf.mxu0 }
 0x329   :  { %2310 = vtanh.f32 %v393_v21  ;;  %v2130_v22 = vmul.f32 -1.442695, %v393_v21 }
 0x32a   :  { %v390_v23 = vpop.f32.mrf.mxu0 }
 0x334   :  { %v510_v24 = vpop.f32.mrf.mxu0 }
 0x335   :  { %v517_v52 = vadd.f32 %v2131_v51, %v510_v24 }
 0x336   :  { %v512_v26 = vpop.f32.mrf.mxu0  ;;  %v2311_v27 = vpop.eup %2310 }
 0x337   :  { %413 = vrot.lane.b32.xlu0 %v2311_v27, %s2545_s18  ;;  %v518_v37 = vadd.f32 %v2132_v25, %v512_v26  ;;  %v2135_v54 = vmul.f32 -1.442695, %v517_v52 }
 0x338   :  { %v514_v28 = vpop.f32.mrf.mxu0 }
 0x339   :  { %2312 = vtanh.f32 %v518_v37  ;;  %v2136_v24 = vmul.f32 -1.442695, %v518_v37 }
 0x33a   :  { %v515_v46 = vpop.f32.mrf.mxu0  ;;  %2314 = vpow2.f32 %v2129_v48 }
 0x33b   :  { %408 = vrot.lane.b32.xlu0 %v86_v39, %s2545_s18  ;;  %2316 = vpow2.f32 %v2135_v54 }
 0x346   :  { %v2313_v47 = vpop.eup %2312 }
 0x347   :  { %534 = vrot.lane.b32.xlu1 %v2313_v47, %s2545_s18  ;;  %v2315_v53 = vpop.eup %2314 }
 0x348   :  { %v400_v55 = vadd.f32 1.0, %v2315_v53  ;;  %v2317_v57 = vpop.eup %2316 }
 0x349   :  { %v525_v61 = vadd.f32 1.0, %v2317_v57 }
 0x34a   :  { %2318 = vrcp.f32 %v400_v55 }
 0x34b   :  { %2320 = vrcp.f32 %v525_v61 }
 0x357   :  { %v2319_v58 = vpop.eup %2318 }
 0x358   :  { %v2321_v62 = vpop.eup %2320 }
 0x359   :  { %v532_v17 = vmul.f32 %v2321_v62, %v2707_v49 }
 0x3a9   :  { %v414_v59 = vpop.permute.xlu0 %413 }
 0x3aa   :  { %v416_v60 = vmul.f32 %v2319_v58, %v414_v59 }
 0x3ac   :  { %418 = vrot.lane.b32.xlu1 %v416_v60, %s2545_s18 }
 0x3ad   :  { %v409_v11 = vpop.permute.xlu0 %408 }
 0x3ae   :  { %v411_v12 = vmul.f32 %v2319_v58, %v409_v11  ;;  %v2141_v11 = vld [vmem:[%s3179_s0 + $0x28] sm:$0xff] }
 0x3b9   :  { %v535_v63 = vpop.permute.xlu1 %534 }
 0x3ba   :  { %v537_v0 = vmul.f32 %v2321_v62, %v535_v63 }
 0x3bc   :  { %539 = vrot.lane.b32.xlu0 %v537_v0, %s2545_s18 }
 0x41e   :  { %v419_v13 = vpop.permute.xlu1 %418 }
 0x41f   :  { %v2756_v14 = vadd.f32 %v419_v13, %v411_v12 }
 0x421   :  { %2322 = vtanh.f32 %v2756_v14 }
 0x42e   :  { %v2323_v16 = vpop.eup %2322  ;;  %v540_v18 = vpop.permute.xlu0 %539 }
 0x42f   :  { %424 = vrot.lane.b32.xlu1 %v2323_v16, %s2545_s18  ;;  %v2761_v19 = vadd.f32 %v540_v18, %v532_v17 }
 0x431   :  { %2324 = vtanh.f32 %v2761_v19 }
 0x432   :  { %2326 = vpow2.f32 %v2130_v22 }
 0x433   :  { %2328 = vpow2.f32 %v2136_v24 }
 0x43e   :  { %v2325_v20 = vpop.eup %2324 }
 0x43f   :  { %545 = vrot.lane.b32.xlu0 %v2325_v20, %s2545_s18  ;;  %v2327_v23 = vpop.eup %2326 }
 0x440   :  { %v401_v25 = vadd.f32 1.0, %v2327_v23  ;;  %v2329_v26 = vpop.eup %2328  ;;  %v2140_v23 = vld [vmem:[%s3179_s0 + $0x20] sm:$0xff] }
 0x441   :  { %v526_v49 = vadd.f32 1.0, %v2329_v26 }
 0x442   :  { %2330 = vrcp.f32 %v401_v25 }
 0x443   :  { %2332 = vrcp.f32 %v526_v49 }
 0x44f   :  { %v2331_v27 = vpop.eup %2330 }
 0x450   :  { %v2333_v21 = vpop.eup %2332 }
 0x4a1   :  { %v425_v28 = vpop.permute.xlu1 %424 }
 0x4a2   :  { %v427_v39 = vmul.f32 %v2331_v27, %v425_v28 }
 0x4a4   :  { %v431_v46 = vpack.c.bf16 %v427_v39, %v427_v39 }
 0x4a6   :  { %2133 = vmatmul.mubr.msk.bf16.vlgmr.msra.gmra.mxu1 %vm53_vm0, %v431_v46 }
 0x4a7   :  { %562 = vmatpush1.bf16.msra.mxu1 %v2684_v40  ;;  %585 = vmatprep.mubr.bf16.mxu1 %v2543_v1 }
 0x4a8   :  { %563 = vmatprep.subr.bf16.mxu1 %v2688_v41 }
 0x4ab   :  { %564 = vmatpush1.bf16.msra.mxu1 %v2693_v42 }
 0x4ac   :  { %565 = vmatprep.subr.bf16.mxu1 %v2697_v43 }
 0x4af   :  { %566 = vmatpush1.bf16.msra.mxu1 %v2700_v44 }
 0x4b0   :  { %567 = vmatprep.subr.bf16.mxu1 %v2703_v45 }
 0x4b1   :  { %v546_v37 = vpop.permute.xlu0 %545 }
 0x4b2   :  { %v548_v47 = vmul.f32 %v2333_v21, %v546_v37 }
 0x4b3   :  { %568 = vmatpush1.bf16.msra.mxu1 %v2709_v50 }
 0x4b4   :  { %682 = vmatprep.subr.bf16.mxu1 %v2613_v3  ;;  %v549_v48 = vpack.c.bf16 %v548_v47, %v548_v47 }
 0x4b6   :  { %2137 = vmatmul.mubr.msk.bf16.vlgmr.msra.gmra.mxu1 %vm53_vm0, %v549_v48 }
 0x4b7   :  { %683 = vmatpush1.bf16.msra.mxu1 %v2615_v4  ;;  %706 = vmatprep.mubr.bf16.mxu1 %v2543_v1 }
 0x4b8   :  { %684 = vmatprep.subr.bf16.mxu1 %v2618_v5 }
 0x4bb   :  { %685 = vmatpush1.bf16.msra.mxu1 %v2621_v6 }
 0x4bc   :  { %686 = vmatprep.subr.bf16.mxu1 %v2624_v7 }
 0x4bf   :  { %687 = vmatpush1.bf16.msra.mxu1 %v2626_v8 }
 0x4c0   :  { %688 = vmatprep.subr.bf16.mxu1 %v2628_v9 }
 0x4c3   :  { %689 = vmatpush1.bf16.msra.mxu1 %v2633_v10 }
 0x4c4   :  { %839 = vmatprep.subr.bf16.mxu1 %v2651_v29 }
 0x4c6   :  { %2143 = vmatmul.mubr.msk.bf16.vlgmr.msra.gmra.mxu1 %vm53_vm0, %v549_v48 }
 0x4c7   :  { %840 = vmatpush1.bf16.msra.mxu1 %v2653_v30  ;;  %863 = vmatprep.mubr.bf16.mxu1 %v2543_v1 }
 0x4c8   :  { %841 = vmatprep.subr.bf16.mxu1 %v2655_v31 }
 0x4cb   :  { %842 = vmatpush1.bf16.msra.mxu1 %v2660_v32 }
 0x4cc   :  { %843 = vmatprep.subr.bf16.mxu1 %v2664_v33 }
 0x4cf   :  { %844 = vmatpush1.bf16.msra.mxu1 %v2668_v34 }
 0x4d0   :  { %845 = vmatprep.subr.bf16.mxu1 %v2672_v35 }
 0x4d3   :  { %846 = vmatpush1.bf16.msra.mxu1 %v2676_v36 }
 0x4d4   :  { %957 = vmatprep.subr.bf16.mxu1 %v2680_v38 }
 0x566   :  { %v469_v51 = vpop.f32.mrf.mxu1 }
 0x567   :  { %v470_v55 = vadd.f32 %v469_v51, %v2718_v56 }
 0x568   :  { %v471_v52 = vpop.f32.mrf.mxu1 }
 0x569   :  { %v472_v58 = vadd.f32 %v471_v52, %v2741_v15 }
 0x56a   :  { %v473_v53 = vpop.f32.mrf.mxu1 }
 0x56c   :  { %v474_v54 = vpop.f32.mrf.mxu1 }
 0x576   :  { %v587_v57 = vpop.f32.mrf.mxu1 }
 0x577   :  { %v594_v59 = vadd.f32 %v587_v57, %v470_v55 }
 0x578   :  { %v589_v60 = vpop.f32.mrf.mxu1 }
 0x579   :  { %v595_v61 = vadd.f32 %v589_v60, %v472_v58  ;;  %v2138_v22 = vmul.f32 -1.442695, %v594_v59 }
 0x57a   :  { %v591_v62 = vpop.f32.mrf.mxu1 }
 0x57b   :  { %2334 = vtanh.f32 %v595_v61  ;;  %v2139_v60 = vmul.f32 -1.442695, %v595_v61 }
 0x57c   :  { %v592_v63 = vpop.f32.mrf.mxu1 }
 0x586   :  { %v708_v0 = vpop.f32.mrf.mxu1 }
 0x587   :  { %v715_v24 = vadd.f32 %v2140_v23, %v708_v0 }
 0x588   :  { %v710_v12 = vpop.f32.mrf.mxu1  ;;  %v2335_v13 = vpop.eup %2334 }
 0x589   :  { %611 = vrot.lane.b32.xlu1 %v2335_v13, %s2545_s18  ;;  %v716_v17 = vadd.f32 %v2141_v11, %v710_v12  ;;  %v2144_v26 = vmul.f32 -1.442695, %v715_v24 }
 0x58a   :  { %v712_v16 = vpop.f32.mrf.mxu1 }
 0x58b   :  { %2336 = vtanh.f32 %v716_v17  ;;  %v2145_v62 = vmul.f32 -1.442695, %v716_v17 }
 0x58c   :  { %v713_v18 = vpop.f32.mrf.mxu1  ;;  %2338 = vpow2.f32 %v2138_v22 }
 0x58d   :  { %2340 = vpow2.f32 %v2144_v26 }
 0x598   :  { %v2337_v20 = vpop.eup %2336 }
 0x599   :  { %732 = vrot.lane.b32.xlu0 %v2337_v20, %s2545_s18  ;;  %v2339_v25 = vpop.eup %2338 }
 0x59a   :  { %v602_v27 = vadd.f32 1.0, %v2339_v25  ;;  %v2341_v28 = vpop.eup %2340 }
 0x59b   :  { %v723_v21 = vadd.f32 1.0, %v2341_v28 }
 0x59c   :  { %2342 = vrcp.f32 %v602_v27 }
 0x59d   :  { %2344 = vrcp.f32 %v723_v21 }
 0x5a9   :  { %v2343_v39 = vpop.eup %2342 }
 0x5aa   :  { %v2345_v37 = vpop.eup %2344  ;;  %v609_v51 = vmul.f32 %v2343_v39, %v2756_v14 }
 0x5ab   :  { %v730_v55 = vmul.f32 %v2345_v37, %v2761_v19 }
 0x5fb   :  { %v612_v49 = vpop.permute.xlu1 %611 }
 0x5fc   :  { %v614_v46 = vmul.f32 %v2343_v39, %v612_v49 }
 0x5fe   :  { %616 = vrot.lane.b32.xlu1 %v614_v46, %s2545_s18 }
 0x60b   :  { %v733_v47 = vpop.permute.xlu0 %732 }
 0x60c   :  { %v735_v48 = vmul.f32 %v2345_v37, %v733_v47 }
 0x60e   :  { %737 = vrot.lane.b32.xlu0 %v735_v48, %s2545_s18  ;;  %v2150_v48 = vld [vmem:[%s3179_s0 + $0x38] sm:$0xff] }
 0x670   :  { %v617_v52 = vpop.permute.xlu1 %616 }
 0x671   :  { %v2808_v53 = vadd.f32 %v617_v52, %v609_v51 }
 0x673   :  { %2346 = vtanh.f32 %v2808_v53 }
 0x680   :  { %v2347_v54 = vpop.eup %2346  ;;  %v738_v57 = vpop.permute.xlu0 %737 }
 0x681   :  { %622 = vrot.lane.b32.xlu1 %v2347_v54, %s2545_s18  ;;  %v2813_v58 = vadd.f32 %v738_v57, %v730_v55 }
 0x683   :  { %2348 = vtanh.f32 %v2813_v58 }
 0x684   :  { %2350 = vpow2.f32 %v2139_v60 }
 0x685   :  { %2352 = vpow2.f32 %v2145_v62 }
 0x690   :  { %v2349_v59 = vpop.eup %2348 }
 0x691   :  { %743 = vrot.lane.b32.xlu0 %v2349_v59, %s2545_s18  ;;  %v2351_v14 = vpop.eup %2350 }
 0x692   :  { %v603_v63 = vadd.f32 1.0, %v2351_v14  ;;  %v2353_v0 = vpop.eup %2352  ;;  %v2149_v14 = vld [vmem:[%s3179_s0 + $0x30] sm:$0xff] }
 0x693   :  { %v724_v19 = vadd.f32 1.0, %v2353_v0 }
 0x694   :  { %2354 = vrcp.f32 %v603_v63 }
 0x695   :  { %2356 = vrcp.f32 %v724_v19 }
 0x6a1   :  { %v2355_v11 = vpop.eup %2354 }
 0x6a2   :  { %v2357_v61 = vpop.eup %2356 }
 0x6f3   :  { %v623_v12 = vpop.permute.xlu1 %622 }
 0x6f4   :  { %v625_v13 = vmul.f32 %v2355_v11, %v623_v12 }
 0x6f6   :  { %v629_v16 = vpack.c.bf16 %v625_v13, %v625_v13 }
 0x6f8   :  { %2142 = vmatmul.mubr.msk.bf16.vlgmr.msra.gmra.mxu0 %vm53_vm0, %v629_v16 }
 0x6f9   :  { %760 = vmatpush1.bf16.msra.mxu0 %v2684_v40  ;;  %783 = vmatprep.mubr.bf16.mxu0 %v2543_v1 }
 0x6fa   :  { %761 = vmatprep.subr.bf16.mxu0 %v2688_v41 }
 0x6fd   :  { %762 = vmatpush1.bf16.msra.mxu0 %v2693_v42 }
 0x6fe   :  { %763 = vmatprep.subr.bf16.mxu0 %v2697_v43 }
 0x701   :  { %764 = vmatpush1.bf16.msra.mxu0 %v2700_v44 }
 0x702   :  { %765 = vmatprep.subr.bf16.mxu0 %v2703_v45 }
 0x703   :  { %v744_v17 = vpop.permute.xlu0 %743 }
 0x704   :  { %v746_v18 = vmul.f32 %v2357_v61, %v744_v17 }
 0x705   :  { %766 = vmatpush1.bf16.msra.mxu0 %v2709_v50 }
 0x706   :  { %880 = vmatprep.subr.bf16.mxu0 %v2613_v3  ;;  %v747_v20 = vpack.c.bf16 %v746_v18, %v746_v18 }
 0x708   :  { %2146 = vmatmul.mubr.msk.bf16.vlgmr.msra.gmra.mxu0 %vm53_vm0, %v747_v20 }
 0x709   :  { %881 = vmatpush1.bf16.msra.mxu0 %v2615_v4  ;;  %904 = vmatprep.mubr.bf16.mxu0 %v2543_v1 }
 0x70a   :  { %882 = vmatprep.subr.bf16.mxu0 %v2618_v5 }
 0x70d   :  { %883 = vmatpush1.bf16.msra.mxu0 %v2621_v6 }
 0x70e   :  { %884 = vmatprep.subr.bf16.mxu0 %v2624_v7 }
 0x711   :  { %885 = vmatpush1.bf16.msra.mxu0 %v2626_v8 }
 0x712   :  { %886 = vmatprep.subr.bf16.mxu0 %v2628_v9 }
 0x715   :  { %887 = vmatpush1.bf16.msra.mxu0 %v2633_v10 }
 0x716   :  { %1037 = vmatprep.subr.bf16.mxu0 %v2651_v29 }
 0x718   :  { %2152 = vmatmul.mubr.msk.bf16.vlgmr.msra.gmra.mxu0 %vm53_vm0, %v747_v20 }
 0x719   :  { %1038 = vmatpush1.bf16.msra.mxu0 %v2653_v30  ;;  %1061 = vmatprep.mubr.bf16.mxu0 %v2543_v1 }
 0x71a   :  { %1039 = vmatprep.subr.bf16.mxu0 %v2655_v31 }
 0x71d   :  { %1040 = vmatpush1.bf16.msra.mxu0 %v2660_v32 }
 0x71e   :  { %1041 = vmatprep.subr.bf16.mxu0 %v2664_v33 }
 0x721   :  { %1042 = vmatpush1.bf16.msra.mxu0 %v2668_v34 }
 0x722   :  { %1043 = vmatprep.subr.bf16.mxu0 %v2672_v35 }
 0x725   :  { %1044 = vmatpush1.bf16.msra.mxu0 %v2676_v36 }
 0x726   :  { %1155 = vmatprep.subr.bf16.mxu0 %v2680_v38 }
 0x7b8   :  { %v667_v22 = vpop.f32.mrf.mxu0 }
 0x7b9   :  { %v668_v26 = vadd.f32 %v667_v22, %v2718_v56 }
 0x7ba   :  { %v669_v23 = vpop.f32.mrf.mxu0 }
 0x7bb   :  { %v670_v28 = vadd.f32 %v669_v23, %v2741_v15 }
 0x7bc   :  { %v671_v24 = vpop.f32.mrf.mxu0 }
 0x7be   :  { %v672_v25 = vpop.f32.mrf.mxu0 }
 0x7c8   :  { %v785_v27 = vpop.f32.mrf.mxu0 }
 0x7c9   :  { %v792_v39 = vadd.f32 %v785_v27, %v668_v26 }
 0x7ca   :  { %v787_v49 = vpop.f32.mrf.mxu0 }
 0x7cb   :  { %v793_v46 = vadd.f32 %v787_v49, %v670_v28  ;;  %v2147_v60 = vmul.f32 -1.442695, %v792_v39 }
 0x7cc   :  { %v789_v21 = vpop.f32.mrf.mxu0 }
 0x7cd   :  { %2358 = vtanh.f32 %v793_v46  ;;  %v2148_v49 = vmul.f32 -1.442695, %v793_v46 }
 0x7ce   :  { %v790_v37 = vpop.f32.mrf.mxu0 }
 0x7d8   :  { %v906_v47 = vpop.f32.mrf.mxu0 }
 0x7d9   :  { %v913_v62 = vadd.f32 %v2149_v14, %v906_v47 }
 0x7da   :  { %v908_v51 = vpop.f32.mrf.mxu0  ;;  %v2359_v52 = vpop.eup %2358 }
 0x7db   :  { %809 = vrot.lane.b32.xlu1 %v2359_v52, %s2545_s18  ;;  %v914_v55 = vadd.f32 %v2150_v48, %v908_v51  ;;  %v2153_v0 = vmul.f32 -1.442695, %v913_v62 }
 0x7dc   :  { %v910_v54 = vpop.f32.mrf.mxu0 }
 0x7dd   :  { %2360 = vtanh.f32 %v914_v55  ;;  %v2154_v21 = vmul.f32 -1.442695, %v914_v55 }
 0x7de   :  { %v911_v57 = vpop.f32.mrf.mxu0  ;;  %2362 = vpow2.f32 %v2147_v60 }
 0x7df   :  { %2364 = vpow2.f32 %v2153_v0 }
 0x7ea   :  { %v2361_v59 = vpop.eup %2360 }
 0x7eb   :  { %930 = vrot.lane.b32.xlu0 %v2361_v59, %s2545_s18  ;;  %v2363_v63 = vpop.eup %2362 }
 0x7ec   :  { %v800_v11 = vadd.f32 1.0, %v2363_v63  ;;  %v2365_v12 = vpop.eup %2364 }
 0x7ed   :  { %v921_v61 = vadd.f32 1.0, %v2365_v12 }
 0x7ee   :  { %2366 = vrcp.f32 %v800_v11  ;;  %v2159_v11 = vld [vmem:[%s3179_s0 + $0x48] sm:$0xff] }
 0x7ef   :  { %2368 = vrcp.f32 %v921_v61 }
 0x7fb   :  { %v2367_v13 = vpop.eup %2366 }
 0x7fc   :  { %v2369_v17 = vpop.eup %2368  ;;  %v807_v22 = vmul.f32 %v2367_v13, %v2808_v53 }
 0x7fd   :  { %v928_v26 = vmul.f32 %v2369_v17, %v2813_v58 }
 0x84d   :  { %v810_v19 = vpop.permute.xlu1 %809 }
 0x84e   :  { %v812_v16 = vmul.f32 %v2367_v13, %v810_v19 }
 0x850   :  { %814 = vrot.lane.b32.xlu1 %v812_v16, %s2545_s18 }
 0x85d   :  { %v931_v18 = vpop.permute.xlu0 %930 }
 0x85e   :  { %v933_v20 = vmul.f32 %v2369_v17, %v931_v18 }
 0x860   :  { %935 = vrot.lane.b32.xlu0 %v933_v20, %s2545_s18  ;;  %v2158_v20 = vld [vmem:[%s3179_s0 + $0x40] sm:$0xff] }
 0x8c2   :  { %v815_v23 = vpop.permute.xlu1 %814 }
 0x8c3   :  { %v2860_v24 = vadd.f32 %v815_v23, %v807_v22 }
 0x8c5   :  { %2370 = vtanh.f32 %v2860_v24 }
 0x8d2   :  { %v2371_v25 = vpop.eup %2370  ;;  %v936_v27 = vpop.permute.xlu0 %935 }
 0x8d3   :  { %820 = vrot.lane.b32.xlu1 %v2371_v25, %s2545_s18  ;;  %v2865_v28 = vadd.f32 %v936_v27, %v928_v26 }
 0x8d5   :  { %2372 = vtanh.f32 %v2865_v28 }
 0x8d6   :  { %2374 = vpow2.f32 %v2148_v49 }
 0x8d7   :  { %2376 = vpow2.f32 %v2154_v21 }
 0x8e2   :  { %v2373_v39 = vpop.eup %2372 }
 0x8e3   :  { %941 = vrot.lane.b32.xlu0 %v2373_v39, %s2545_s18  ;;  %v2375_v53 = vpop.eup %2374 }
 0x8e4   :  { %v801_v37 = vadd.f32 1.0, %v2375_v53  ;;  %v2377_v47 = vpop.eup %2376 }
 0x8e5   :  { %v922_v58 = vadd.f32 1.0, %v2377_v47 }
 0x8e6   :  { %2378 = vrcp.f32 %v801_v37 }
 0x8e7   :  { %2380 = vrcp.f32 %v922_v58 }
 0x8f3   :  { %v2379_v48 = vpop.eup %2378 }
 0x8f4   :  { %v2381_v46 = vpop.eup %2380 }
 0x945   :  { %v821_v51 = vpop.permute.xlu1 %820 }
 0x946   :  { %v823_v52 = vmul.f32 %v2379_v48, %v821_v51 }
 0x948   :  { %v827_v54 = vpack.c.bf16 %v823_v52, %v823_v52 }
 0x94a   :  { %2151 = vmatmul.mubr.msk.bf16.vlgmr.msra.gmra.mxu1 %vm53_vm0, %v827_v54 }
 0x94b   :  { %958 = vmatpush1.bf16.msra.mxu1 %v2684_v40  ;;  %981 = vmatprep.mubr.bf16.mxu1 %v2543_v1 }
 0x94c   :  { %959 = vmatprep.subr.bf16.mxu1 %v2688_v41 }
 0x94f   :  { %960 = vmatpush1.bf16.msra.mxu1 %v2693_v42 }
 0x950   :  { %961 = vmatprep.subr.bf16.mxu1 %v2697_v43 }
 0x953   :  { %962 = vmatpush1.bf16.msra.mxu1 %v2700_v44 }
 0x954   :  { %963 = vmatprep.subr.bf16.mxu1 %v2703_v45 }
 0x955   :  { %v942_v55 = vpop.permute.xlu0 %941 }
 0x956   :  { %v944_v57 = vmul.f32 %v2381_v46, %v942_v55 }
 0x957   :  { %964 = vmatpush1.bf16.msra.mxu1 %v2709_v50 }
 0x958   :  { %1078 = vmatprep.subr.bf16.mxu1 %v2613_v3  ;;  %v945_v59 = vpack.c.bf16 %v944_v57, %v944_v57 }
 0x95a   :  { %2155 = vmatmul.mubr.msk.bf16.vlgmr.msra.gmra.mxu1 %vm53_vm0, %v945_v59 }
 0x95b   :  { %1079 = vmatpush1.bf16.msra.mxu1 %v2615_v4  ;;  %1102 = vmatprep.mubr.bf16.mxu1 %v2543_v1 }
 0x95c   :  { %1080 = vmatprep.subr.bf16.mxu1 %v2618_v5 }
 0x95f   :  { %1081 = vmatpush1.bf16.msra.mxu1 %v2621_v6 }
 0x960   :  { %1082 = vmatprep.subr.bf16.mxu1 %v2624_v7 }
 0x963   :  { %1083 = vmatpush1.bf16.msra.mxu1 %v2626_v8 }
 0x964   :  { %1084 = vmatprep.subr.bf16.mxu1 %v2628_v9 }
 0x967   :  { %1085 = vmatpush1.bf16.msra.mxu1 %v2633_v10 }
 0x968   :  { %1235 = vmatprep.subr.bf16.mxu1 %v2651_v29 }
 0x96a   :  { %2161 = vmatmul.mubr.msk.bf16.vlgmr.msra.gmra.mxu1 %vm53_vm0, %v945_v59 }
 0x96b   :  { %1236 = vmatpush1.bf16.msra.mxu1 %v2653_v30  ;;  %1259 = vmatprep.mubr.bf16.mxu1 %v2543_v1 }
 0x96c   :  { %1237 = vmatprep.subr.bf16.mxu1 %v2655_v31 }
 0x96f   :  { %1238 = vmatpush1.bf16.msra.mxu1 %v2660_v32 }
 0x970   :  { %1239 = vmatprep.subr.bf16.mxu1 %v2664_v33 }
 0x973   :  { %1240 = vmatpush1.bf16.msra.mxu1 %v2668_v34 }
 0x974   :  { %1241 = vmatprep.subr.bf16.mxu1 %v2672_v35 }
 0x977   :  { %1242 = vmatpush1.bf16.msra.mxu1 %v2676_v36 }
 0x978   :  { %1353 = vmatprep.subr.bf16.mxu1 %v2680_v38 }
 0xa0a   :  { %v865_v3 = vpop.f32.mrf.mxu1 }
 0xa0b   :  { %v866_v7 = vadd.f32 %v865_v3, %v2718_v56 }
 0xa0c   :  { %v867_v4 = vpop.f32.mrf.mxu1 }
 0xa0d   :  { %v868_v9 = vadd.f32 %v867_v4, %v2741_v15 }
 0xa0e   :  { %v869_v5 = vpop.f32.mrf.mxu1 }
 0xa10   :  { %v870_v6 = vpop.f32.mrf.mxu1 }
 0xa1a   :  { %v983_v8 = vpop.f32.mrf.mxu1 }
 0xa1b   :  { %v990_v10 = vadd.f32 %v983_v8, %v866_v7 }
 0xa1c   :  { %v985_v60 = vpop.f32.mrf.mxu1 }
 0xa1d   :  { %v991_v14 = vadd.f32 %v985_v60, %v868_v9  ;;  %v2156_v18 = vmul.f32 -1.442695, %v990_v10 }
 0xa1e   :  { %v987_v62 = vpop.f32.mrf.mxu1 }
 0xa1f   :  { %2382 = vtanh.f32 %v991_v14  ;;  %v2157_v3 = vmul.f32 -1.442695, %v991_v14  ;;  %v2930_v62 = vld [vmem:[#allocation7 + $0x94] ss:$24 sps:$4 sm:$0xff]  }
 0xa20   :  { %v988_v63 = vpop.f32.mrf.mxu1 }
 0xa2a   :  { %v1104_v0 = vpop.f32.mrf.mxu1 }
 0xa2b   :  { %v1111_v22 = vadd.f32 %v2158_v20, %v1104_v0  ;;  %v2953_v0 = vld [vmem:[#allocation7] ss:$24 sps:$4 sm:$0xff]  }
 0xa2c   :  { %v1106_v12 = vpop.f32.mrf.mxu1  ;;  %v2383_v13 = vpop.eup %2382 }
 0xa2d   :  { %1007 = vrot.lane.b32.xlu1 %v2383_v13, %s2545_s18  ;;  %v1112_v16 = vadd.f32 %v2159_v11, %v1106_v12  ;;  %v2162_v25 = vmul.f32 -1.442695, %v1111_v22 }
 0xa2e   :  { %v1108_v19 = vpop.f32.mrf.mxu1 }
 0xa2f   :  { %2384 = vtanh.f32 %v1112_v16  ;;  %v2163_v4 = vmul.f32 -1.442695, %v1112_v16 }
 0xa30   :  { %v1109_v61 = vpop.f32.mrf.mxu1  ;;  %2386 = vpow2.f32 %v2156_v18 }
 0xa31   :  { %2388 = vpow2.f32 %v2162_v25 }
 0xa3c   :  { %v2385_v17 = vpop.eup %2384 }
 0xa3d   :  { %1128 = vrot.lane.b32.xlu0 %v2385_v17, %s2545_s18  ;;  %v2387_v23 = vpop.eup %2386 }
 0xa3e   :  { %v998_v26 = vadd.f32 1.0, %v2387_v23  ;;  %v2389_v27 = vpop.eup %2388 }
 0xa3f   :  { %v1119_v21 = vadd.f32 1.0, %v2389_v27 }
 0xa40   :  { %2390 = vrcp.f32 %v998_v26  ;;  %v2167_v26 = vld [vmem:[%s3179_s0 + $0x50] sm:$0xff] }
 0xa41   :  { %2392 = vrcp.f32 %v1119_v21 }
 0xa4d   :  { %v2391_v39 = vpop.eup %2390 }
 0xa4e   :  { %v2393_v37 = vpop.eup %2392  ;;  %v1005_v51 = vmul.f32 %v2391_v39, %v2860_v24 }
 0xa4f   :  { %v1126_v46 = vmul.f32 %v2393_v37, %v2865_v28 }
 0xa9f   :  { %v1008_v49 = vpop.permute.xlu1 %1007 }
 0xaa0   :  { %v1010_v53 = vmul.f32 %v2391_v39, %v1008_v49 }
 0xaa2   :  { %1012 = vrot.lane.b32.xlu1 %v1010_v53, %s2545_s18 }
 0xaaf   :  { %v1129_v47 = vpop.permute.xlu0 %1128 }
 0xab0   :  { %v1131_v48 = vmul.f32 %v2393_v37, %v1129_v47 }
 0xab2   :  { %1133 = vrot.lane.b32.xlu0 %v1131_v48, %s2545_s18 }
 0xb14   :  { %v1013_v52 = vpop.permute.xlu1 %1012 }
 0xb15   :  { %v2912_v58 = vadd.f32 %v1013_v52, %v1005_v51 }
 0xb17   :  { %2394 = vtanh.f32 %v2912_v58 }
 0xb24   :  { %v2395_v54 = vpop.eup %2394  ;;  %v1134_v55 = vpop.permute.xlu0 %1133 }
 0xb25   :  { %1018 = vrot.lane.b32.xlu1 %v2395_v54, %s2545_s18  ;;  %v2917_v57 = vadd.f32 %v1134_v55, %v1126_v46 }
 0xb27   :  { %2396 = vtanh.f32 %v2917_v57 }
 0xb28   :  { %2398 = vpow2.f32 %v2157_v3 }
 0xb29   :  { %2400 = vpow2.f32 %v2163_v4 }
 0xb34   :  { %v2397_v59 = vpop.eup %2396 }
 0xb35   :  { %1139 = vrot.lane.b32.xlu0 %v2397_v59, %s2545_s18  ;;  %v2399_v24 = vpop.eup %2398 }
 0xb36   :  { %v999_v5 = vadd.f32 1.0, %v2399_v24  ;;  %v2401_v6 = vpop.eup %2400 }
 0xb37   :  { %v1120_v28 = vadd.f32 1.0, %v2401_v6 }
 0xb38   :  { %2402 = vrcp.f32 %v999_v5 }
 0xb39   :  { %2404 = vrcp.f32 %v1120_v28 }
 0xb45   :  { %v2403_v7 = vpop.eup %2402 }
 0xb46   :  { %v2405_v60 = vpop.eup %2404 }
 0xb97   :  { %v1019_v8 = vpop.permute.xlu1 %1018 }
 0xb98   :  { %v1021_v9 = vmul.f32 %v2403_v7, %v1019_v8 }
 0xb9a   :  { %v1025_v10 = vpack.c.bf16 %v1021_v9, %v1021_v9 }
 0xb9c   :  { %2160 = vmatmul.mubr.msk.bf16.vlgmr.msra.gmra.mxu0 %vm53_vm0, %v1025_v10 }
 0xb9d   :  { %1156 = vmatpush1.bf16.msra.mxu0 %v2684_v40  ;;  %1179 = vmatprep.mubr.bf16.mxu0 %v2543_v1 }
 0xb9e   :  { %1157 = vmatprep.subr.bf16.mxu0 %v2688_v41  ;;  %v2934_v41 = vld [vmem:[#allocation7 + $0x90] ss:$24 sps:$4 sm:$0xff]  }
 0xba1   :  { %1158 = vmatpush1.bf16.msra.mxu0 %v2693_v42  ;;  %v2938_v42 = vld [vmem:[#allocation7 + $0x64] ss:$24 sps:$4 sm:$0xff]  }
 0xba2   :  { %1159 = vmatprep.subr.bf16.mxu0 %v2697_v43  ;;  %v2941_v43 = vld [vmem:[#allocation7 + $0x60] ss:$24 sps:$4 sm:$0xff]  }
 0xba5   :  { %1160 = vmatpush1.bf16.msra.mxu0 %v2700_v44  ;;  %v2944_v44 = vld [vmem:[#allocation7 + $0x34] ss:$24 sps:$4 sm:$0xff]  }
 0xba6   :  { %1161 = vmatprep.subr.bf16.mxu0 %v2703_v45  ;;  %v2947_v45 = vld [vmem:[#allocation7 + $0x30] ss:$24 sps:$4 sm:$0xff]  }
 0xba7   :  { %v1140_v14 = vpop.permute.xlu0 %1139 }
 0xba8   :  { %v1142_v40 = vmul.f32 %v2405_v60, %v1140_v14 }
 0xba9   :  { %1162 = vmatpush1.bf16.msra.mxu0 %v2709_v50  ;;  %v2950_v50 = vld [vmem:[#allocation7 + $0x4] ss:$24 sps:$4 sm:$0xff]  }
 0xbaa   :  { %1276 = vmatprep.subr.bf16.mxu0 %v2930_v62  ;;  %v1143_v63 = vpack.c.bf16 %v1142_v40, %v1142_v40 }
 0xbac   :  { %2164 = vmatmul.mubr.msk.bf16.vlgmr.msra.gmra.mxu0 %vm53_vm0, %v1143_v63 }
 0xbad   :  { %1277 = vmatpush1.bf16.msra.mxu0 %v2934_v41  ;;  %1300 = vmatprep.mubr.bf16.mxu0 %v2543_v1 }
 0xbae   :  { %1278 = vmatprep.subr.bf16.mxu0 %v2938_v42 }
 0xbb1   :  { %1279 = vmatpush1.bf16.msra.mxu0 %v2941_v43 }
 0xbb2   :  { %1280 = vmatprep.subr.bf16.mxu0 %v2944_v44 }
 0xbb5   :  { %1281 = vmatpush1.bf16.msra.mxu0 %v2947_v45 }
 0xbb6   :  { %1282 = vmatprep.subr.bf16.mxu0 %v2950_v50 }
 0xbb9   :  { %1283 = vmatpush1.bf16.msra.mxu0 %v2953_v0 }
 0xbba   :  { %1433 = vmatprep.subr.bf16.mxu0 %v2651_v29 }
 0xbbc   :  { %2170 = vmatmul.mubr.msk.bf16.vlgmr.msra.gmra.mxu0 %vm53_vm0, %v1143_v63 }
 0xbbd   :  { %1434 = vmatpush1.bf16.msra.mxu0 %v2653_v30  ;;  %1457 = vmatprep.mubr.bf16.mxu0 %v2543_v1 }
 0xbbe   :  { %1435 = vmatprep.subr.bf16.mxu0 %v2655_v31 }
 0xbc1   :  { %1436 = vmatpush1.bf16.msra.mxu0 %v2660_v32 }
 0xbc2   :  { %1437 = vmatprep.subr.bf16.mxu0 %v2664_v33 }
 0xbc5   :  { %1438 = vmatpush1.bf16.msra.mxu0 %v2668_v34 }
 0xbc6   :  { %1439 = vmatprep.subr.bf16.mxu0 %v2672_v35 }
 0xbc9   :  { %1440 = vmatpush1.bf16.msra.mxu0 %v2676_v36  ;;  %v2168_v36 = vld [vmem:[%s3179_s0 + $0x58] sm:$0xff] }
 0xbca   :  { %1551 = vmatprep.subr.bf16.mxu0 %v2680_v38 }
 0xc5c   :  { %v1063_v29 = vpop.f32.mrf.mxu0 }
 0xc5d   :  { %v1064_v13 = vadd.f32 %v1063_v29, %v2718_v56  ;;  %v2990_v29 = vld [vmem:[#allocation7 + $0x98] ss:$24 sps:$4 sm:$0xff]  }
 0xc5e   :  { %v1065_v11 = vpop.f32.mrf.mxu0 }
 0xc5f   :  { %v1066_v31 = vadd.f32 %v1065_v11, %v2741_v15  ;;  %v2994_v11 = vld [vmem:[#allocation7 + $0x6c] ss:$24 sps:$4 sm:$0xff]  }
 0xc60   :  { %v1067_v12 = vpop.f32.mrf.mxu0 }
 0xc61   :  { %v2997_v12 = vld [vmem:[#allocation7 + $0x68] ss:$24 sps:$4 sm:$0xff]  }
 0xc62   :  { %v1068_v30 = vpop.f32.mrf.mxu0 }
 0xc63   :  { %v3000_v30 = vld [vmem:[#allocation7 + $0x3c] ss:$24 sps:$4 sm:$0xff]  }
 0xc6c   :  { %v1181_v19 = vpop.f32.mrf.mxu0 }
 0xc6d   :  { %v1188_v32 = vadd.f32 %v1181_v19, %v1064_v13  ;;  %v3003_v13 = vld [vmem:[#allocation7 + $0x38] ss:$24 sps:$4 sm:$0xff]   ;;  %v3006_v19 = vld [vmem:[#allocation7 + $0xc] ss:$24 sps:$4 sm:$0xff]  }
 0xc6e   :  { %v1183_v16 = vpop.f32.mrf.mxu0 }
 0xc6f   :  { %v1189_v33 = vadd.f32 %v1183_v16, %v1066_v31  ;;  %v2165_v25 = vmul.f32 -1.442695, %v1188_v32  ;;  %v3009_v31 = vld [vmem:[#allocation7 + $0x8] ss:$24 sps:$4 sm:$0xff]  }
 0xc70   :  { %v1185_v61 = vpop.f32.mrf.mxu0 }
 0xc71   :  { %2406 = vtanh.f32 %v1189_v33  ;;  %v2166_v8 = vmul.f32 -1.442695, %v1189_v33 }
 0xc72   :  { %v1186_v34 = vpop.f32.mrf.mxu0 }
 0xc73   :  { %v2509_v34 = vld [vmem:[#allocation7 + $0xa4] ss:$24 sps:$4 sm:$0xff]  }
 0xc7c   :  { %v1302_v35 = vpop.f32.mrf.mxu0 }
 0xc7d   :  { %v1309_v27 = vadd.f32 %v2167_v26, %v1302_v35  ;;  %v2510_v35 = vld [vmem:[#allocation7 + $0xa0] ss:$24 sps:$4 sm:$0xff]  }
 0xc7e   :  { %v1304_v38 = vpop.f32.mrf.mxu0  ;;  %v2407_v17 = vpop.eup %2406 }
 0xc7f   :  { %1205 = vrot.lane.b32.xlu1 %v2407_v17, %s2545_s18  ;;  %v1310_v20 = vadd.f32 %v2168_v36, %v1304_v38  ;;  %v2171_v49 = vmul.f32 -1.442695, %v1309_v27  ;;  %v2511_v36 = vld [vmem:[#allocation7 + $0x74] ss:$24 sps:$4 sm:$0xff]   ;;  %v2512_v38 = vld [vmem:[#allocation7 + $0x70] ss:$24 sps:$4 sm:$0xff]  }
 0xc80   :  { %v1306_v18 = vpop.f32.mrf.mxu0  ;;  %v2513_v17 = vld [vmem:[#allocation7 + $0x44] ss:$24 sps:$4 sm:$0xff]  }
 0xc81   :  { %2408 = vtanh.f32 %v1310_v20  ;;  %v2172_v9 = vmul.f32 -1.442695, %v1310_v20  ;;  %v2514_v18 = vld [vmem:[#allocation7 + $0x40] ss:$24 sps:$4 sm:$0xff]   ;;  %v2515_v20 = vld [vmem:[#allocation7 + $0x14] ss:$24 sps:$4 sm:$0xff]  }
 0xc82   :  { %v1307_v22 = vpop.f32.mrf.mxu0  ;;  %2410 = vpow2.f32 %v2165_v25 }
 0xc83   :  { %2412 = vpow2.f32 %v2171_v49  ;;  %v2516_v22 = vld [vmem:[#allocation7 + $0x10] ss:$24 sps:$4 sm:$0xff]  }
 0xc8e   :  { %v2409_v23 = vpop.eup %2408 }
 0xc8f   :  { %1326 = vrot.lane.b32.xlu0 %v2409_v23, %s2545_s18  ;;  %v2411_v39 = vpop.eup %2410  ;;  %v2517_v23 = vld [vmem:[#allocation7 + $0x9c] ss:$24 sps:$4 sm:$0xff]  }
 0xc90   :  { %v1196_v53 = vadd.f32 1.0, %v2411_v39  ;;  %v2413_v21 = vpop.eup %2412 }
 0xc91   :  { %v1317_v51 = vadd.f32 1.0, %v2413_v21 }
 0xc92   :  { %2414 = vrcp.f32 %v1196_v53 }
 0xc93   :  { %2416 = vrcp.f32 %v1317_v51 }
 0xc9f   :  { %v2415_v37 = vpop.eup %2414 }
 0xca0   :  { %v2417_v52 = vpop.eup %2416  ;;  %v1203_v55 = vmul.f32 %v2415_v37, %v2912_v58 }
 0xca1   :  { %v1324_v4 = vmul.f32 %v2417_v52, %v2917_v57 }
 0xcf1   :  { %v1206_v47 = vpop.permute.xlu1 %1205 }
 0xcf2   :  { %v1208_v48 = vmul.f32 %v2415_v37, %v1206_v47 }
 0xcf4   :  { %1210 = vrot.lane.b32.xlu1 %v1208_v48, %s2545_s18 }
 0xd01   :  { %v1327_v54 = vpop.permute.xlu0 %1326 }
 0xd02   :  { %v1329_v46 = vmul.f32 %v2417_v52, %v1327_v54 }
 0xd04   :  { %1331 = vrot.lane.b32.xlu0 %v1329_v46, %s2545_s18  ;;  %v2177_v46 = vld [vmem:[%s3179_s0 + $0x68] sm:$0xff] }
 0xd66   :  { %v1211_v59 = vpop.permute.xlu1 %1210 }
 0xd67   :  { %v2980_v3 = vadd.f32 %v1211_v59, %v1203_v55 }
 0xd69   :  { %2418 = vtanh.f32 %v2980_v3 }
 0xd76   :  { %v2419_v24 = vpop.eup %2418  ;;  %v1332_v5 = vpop.permute.xlu0 %1331 }
 0xd77   :  { %1216 = vrot.lane.b32.xlu1 %v2419_v24, %s2545_s18  ;;  %v2985_v6 = vadd.f32 %v1332_v5, %v1324_v4 }
 0xd79   :  { %2420 = vtanh.f32 %v2985_v6 }
 0xd7a   :  { %2422 = vpow2.f32 %v2166_v8 }
 0xd7b   :  { %2424 = vpow2.f32 %v2172_v9 }
 0xd86   :  { %v2421_v7 = vpop.eup %2420 }
 0xd87   :  { %1337 = vrot.lane.b32.xlu0 %v2421_v7, %s2545_s18  ;;  %v2423_v58 = vpop.eup %2422 }
 0xd88   :  { %v1197_v28 = vadd.f32 1.0, %v2423_v58  ;;  %v2425_v10 = vpop.eup %2424  ;;  %v2176_v58 = vld [vmem:[%s3179_s0 + $0x60] sm:$0xff] }
 0xd89   :  { %v1318_v57 = vadd.f32 1.0, %v2425_v10 }
 0xd8a   :  { %2426 = vrcp.f32 %v1197_v28 }
 0xd8b   :  { %2428 = vrcp.f32 %v1318_v57 }
 0xd97   :  { %v2427_v60 = vpop.eup %2426 }
 0xd98   :  { %v2429_v32 = vpop.eup %2428 }
 0xde9   :  { %v1217_v14 = vpop.permute.xlu1 %1216 }
 0xdea   :  { %v1219_v40 = vmul.f32 %v2427_v60, %v1217_v14 }
 0xdec   :  { %v1223_v63 = vpack.c.bf16 %v1219_v40, %v1219_v40 }
 0xdee   :  { %2169 = vmatmul.mubr.msk.bf16.vlgmr.msra.gmra.mxu1 %vm53_vm0, %v1223_v63 }
 0xdef   :  { %1354 = vmatpush1.bf16.msra.mxu1 %v2990_v29  ;;  %1377 = vmatprep.mubr.bf16.mxu1 %v2543_v1 }
 0xdf0   :  { %1355 = vmatprep.subr.bf16.mxu1 %v2994_v11 }
 0xdf3   :  { %1356 = vmatpush1.bf16.msra.mxu1 %v2997_v12 }
 0xdf4   :  { %1357 = vmatprep.subr.bf16.mxu1 %v3000_v30 }
 0xdf7   :  { %1358 = vmatpush1.bf16.msra.mxu1 %v3003_v13 }
 0xdf8   :  { %1359 = vmatprep.subr.bf16.mxu1 %v3006_v19 }
 0xdf9   :  { %v1338_v16 = vpop.permute.xlu0 %1337 }
 0xdfa   :  { %v1340_v33 = vmul.f32 %v2429_v32, %v1338_v16 }
 0xdfb   :  { %1360 = vmatpush1.bf16.msra.mxu1 %v3009_v31 }
 0xdfc   :  { %1474 = vmatprep.subr.bf16.mxu1 %v2930_v62  ;;  %v1341_v61 = vpack.c.bf16 %v1340_v33, %v1340_v33 }
 0xdfe   :  { %2173 = vmatmul.mubr.msk.bf16.vlgmr.msra.gmra.mxu1 %vm53_vm0, %v1341_v61 }
 0xdff   :  { %1475 = vmatpush1.bf16.msra.mxu1 %v2934_v41  ;;  %1498 = vmatprep.mubr.bf16.mxu1 %v2543_v1 }
 0xe00   :  { %1476 = vmatprep.subr.bf16.mxu1 %v2938_v42 }
 0xe03   :  { %1477 = vmatpush1.bf16.msra.mxu1 %v2941_v43 }
 0xe04   :  { %1478 = vmatprep.subr.bf16.mxu1 %v2944_v44 }
 0xe07   :  { %1479 = vmatpush1.bf16.msra.mxu1 %v2947_v45 }
 0xe08   :  { %1480 = vmatprep.subr.bf16.mxu1 %v2950_v50 }
 0xe0b   :  { %1481 = vmatpush1.bf16.msra.mxu1 %v2953_v0 }
 0xe0c   :  { %1631 = vmatprep.subr.bf16.mxu1 %v2509_v34 }
 0xe0e   :  { %2179 = vmatmul.mubr.msk.bf16.vlgmr.msra.gmra.mxu1 %vm53_vm0, %v1341_v61 }
 0xe0f   :  { %1632 = vmatpush1.bf16.msra.mxu1 %v2510_v35  ;;  %1655 = vmatprep.mubr.bf16.mxu1 %v2543_v1 }
 0xe10   :  { %1633 = vmatprep.subr.bf16.mxu1 %v2511_v36 }
 0xe13   :  { %1634 = vmatpush1.bf16.msra.mxu1 %v2512_v38 }
 0xe14   :  { %1635 = vmatprep.subr.bf16.mxu1 %v2513_v17 }
 0xe17   :  { %1636 = vmatpush1.bf16.msra.mxu1 %v2514_v18 }
 0xe18   :  { %1637 = vmatprep.subr.bf16.mxu1 %v2515_v20 }
 0xe1b   :  { %1638 = vmatpush1.bf16.msra.mxu1 %v2516_v22 }
 0xe1c   :  { %1749 = vmatprep.subr.bf16.mxu1 %v2517_v23 }
 0xeae   :  { %v1261_v25 = vpop.f32.mrf.mxu1 }
 0xeaf   :  { %v1262_v49 = vadd.f32 %v1261_v25, %v2718_v56 }
 0xeb0   :  { %v1263_v26 = vpop.f32.mrf.mxu1 }
 0xeb1   :  { %v1264_v21 = vadd.f32 %v1263_v26, %v2741_v15 }
 0xeb2   :  { %v1265_v27 = vpop.f32.mrf.mxu1 }
 0xeb4   :  { %v1266_v39 = vpop.f32.mrf.mxu1 }
 0xebe   :  { %v1379_v53 = vpop.f32.mrf.mxu1 }
 0xebf   :  { %v1386_v37 = vadd.f32 %v1379_v53, %v1262_v49 }
 0xec0   :  { %v1381_v47 = vpop.f32.mrf.mxu1 }
 0xec1   :  { %v1387_v48 = vadd.f32 %v1381_v47, %v1264_v21  ;;  %v2174_v8 = vmul.f32 -1.442695, %v1386_v37 }
 0xec2   :  { %v1383_v51 = vpop.f32.mrf.mxu1 }
 0xec3   :  { %2430 = vtanh.f32 %v1387_v48  ;;  %v2175_v23 = vmul.f32 -1.442695, %v1387_v48 }
 0xec4   :  { %v1384_v52 = vpop.f32.mrf.mxu1 }
 0xece   :  { %v1500_v54 = vpop.f32.mrf.mxu1 }
 0xecf   :  { %v1507_v9 = vadd.f32 %v2176_v58, %v1500_v54 }
 0xed0   :  { %v1502_v55 = vpop.f32.mrf.mxu1  ;;  %v2431_v59 = vpop.eup %2430 }
 0xed1   :  { %1403 = vrot.lane.b32.xlu1 %v2431_v59, %s2545_s18  ;;  %v1508_v4 = vadd.f32 %v2177_v46, %v1502_v55  ;;  %v2180_v10 = vmul.f32 -1.442695, %v1507_v9 }
 0xed2   :  { %v1504_v24 = vpop.f32.mrf.mxu1 }
 0xed3   :  { %2432 = vtanh.f32 %v1508_v4  ;;  %v2181_v25 = vmul.f32 -1.442695, %v1508_v4  ;;  %v2186_v24 = vld [vmem:[%s3179_s0 + $0x78] sm:$0xff] }
 0xed4   :  { %v1505_v5 = vpop.f32.mrf.mxu1  ;;  %2434 = vpow2.f32 %v2174_v8 }
 0xed5   :  { %2436 = vpow2.f32 %v2180_v10  ;;  %v2185_v10 = vld [vmem:[%s3179_s0 + $0x70] sm:$0xff] }
 0xee0   :  { %v2433_v7 = vpop.eup %2432 }
 0xee1   :  { %1524 = vrot.lane.b32.xlu0 %v2433_v7, %s2545_s18  ;;  %v2435_v28 = vpop.eup %2434 }
 0xee2   :  { %v1394_v60 = vadd.f32 1.0, %v2435_v28  ;;  %v2437_v14 = vpop.eup %2436 }
 0xee3   :  { %v1515_v32 = vadd.f32 1.0, %v2437_v14 }
 0xee4   :  { %2438 = vrcp.f32 %v1394_v60 }
 0xee5   :  { %2440 = vrcp.f32 %v1515_v32 }
 0xef1   :  { %v2439_v40 = vpop.eup %2438 }
 0xef2   :  { %v2441_v16 = vpop.eup %2440  ;;  %v1401_v34 = vmul.f32 %v2439_v40, %v2980_v3 }
 0xef3   :  { %v1522_v17 = vmul.f32 %v2441_v16, %v2985_v6 }
 0xf43   :  { %v1404_v57 = vpop.permute.xlu1 %1403 }
 0xf44   :  { %v1406_v63 = vmul.f32 %v2439_v40, %v1404_v57 }
 0xf46   :  { %1408 = vrot.lane.b32.xlu1 %v1406_v63, %s2545_s18 }
 0xf53   :  { %v1525_v33 = vpop.permute.xlu0 %1524 }
 0xf54   :  { %v1527_v61 = vmul.f32 %v2441_v16, %v1525_v33 }
 0xf56   :  { %1529 = vrot.lane.b32.xlu0 %v1527_v61, %s2545_s18 }
 0xfb8   :  { %v1409_v35 = vpop.permute.xlu1 %1408 }
 0xfb9   :  { %v3037_v36 = vadd.f32 %v1409_v35, %v1401_v34 }
 0xfbb   :  { %2442 = vtanh.f32 %v3037_v36 }
 0xfc8   :  { %v2443_v38 = vpop.eup %2442  ;;  %v1530_v18 = vpop.permute.xlu0 %1529 }
 0xfc9   :  { %1414 = vrot.lane.b32.xlu1 %v2443_v38, %s2545_s18  ;;  %v3042_v20 = vadd.f32 %v1530_v18, %v1522_v17 }
 0xfcb   :  { %2444 = vtanh.f32 %v3042_v20 }
 0xfcc   :  { %2446 = vpow2.f32 %v2175_v23 }
 0xfcd   :  { %2448 = vpow2.f32 %v2181_v25 }
 0xfd8   :  { %v2445_v22 = vpop.eup %2444 }
 0xfd9   :  { %1535 = vrot.lane.b32.xlu0 %v2445_v22, %s2545_s18  ;;  %v2447_v3 = vpop.eup %2446 }
 0xfda   :  { %v1395_v26 = vadd.f32 1.0, %v2447_v3  ;;  %v2449_v27 = vpop.eup %2448 }
 0xfdb   :  { %v1516_v6 = vadd.f32 1.0, %v2449_v27 }
 0xfdc   :  { %2450 = vrcp.f32 %v1395_v26 }
 0xfdd   :  { %2452 = vrcp.f32 %v1516_v6 }
 0xfe9   :  { %v2451_v39 = vpop.eup %2450 }
 0xfea   :  { %v2453_v37 = vpop.eup %2452 }
0x103b   :  { %v1415_v49 = vpop.permute.xlu1 %1414 }
0x103c   :  { %v1417_v53 = vmul.f32 %v2451_v39, %v1415_v49 }
0x103e   :  { %v1421_v21 = vpack.c.bf16 %v1417_v53, %v1417_v53 }
0x1040   :  { %2178 = vmatmul.mubr.msk.bf16.vlgmr.msra.gmra.mxu0 %vm53_vm0, %v1421_v21 }
0x1041   :  { %1552 = vmatpush1.bf16.msra.mxu0 %v2990_v29  ;;  %1575 = vmatprep.mubr.bf16.mxu0 %v2543_v1 }
0x1042   :  { %1553 = vmatprep.subr.bf16.mxu0 %v2994_v11 }
0x1045   :  { %1554 = vmatpush1.bf16.msra.mxu0 %v2997_v12 }
0x1046   :  { %1555 = vmatprep.subr.bf16.mxu0 %v3000_v30 }
0x1049   :  { %1556 = vmatpush1.bf16.msra.mxu0 %v3003_v13 }
0x104a   :  { %1557 = vmatprep.subr.bf16.mxu0 %v3006_v19 }
0x104b   :  { %v1536_v47 = vpop.permute.xlu0 %1535 }
0x104c   :  { %v1538_v48 = vmul.f32 %v2453_v37, %v1536_v47 }
0x104d   :  { %1558 = vmatpush1.bf16.msra.mxu0 %v3009_v31 }
0x104e   :  { %1672 = vmatprep.subr.bf16.mxu0 %v2930_v62  ;;  %v1539_v51 = vpack.c.bf16 %v1538_v48, %v1538_v48 }
0x1050   :  { %2182 = vmatmul.mubr.msk.bf16.vlgmr.msra.gmra.mxu0 %vm53_vm0, %v1539_v51 }
0x1051   :  { %1673 = vmatpush1.bf16.msra.mxu0 %v2934_v41  ;;  %1696 = vmatprep.mubr.bf16.mxu0 %v2543_v1 }
0x1052   :  { %1674 = vmatprep.subr.bf16.mxu0 %v2938_v42 }
0x1055   :  { %1675 = vmatpush1.bf16.msra.mxu0 %v2941_v43 }
0x1056   :  { %1676 = vmatprep.subr.bf16.mxu0 %v2944_v44 }
0x1059   :  { %1677 = vmatpush1.bf16.msra.mxu0 %v2947_v45 }
0x105a   :  { %1678 = vmatprep.subr.bf16.mxu0 %v2950_v50 }
0x105d   :  { %1679 = vmatpush1.bf16.msra.mxu0 %v2953_v0 }
0x105e   :  { %2218 = vmatprep.subr.mxu0 %v2544_v2 }
0x1060   :  { %2188 = vmatmul.mubr.msk.bf16.vlgmr.msra.gmra.mxu0 %vm53_vm0, %v1539_v51 }
0x1061   :  { %2234 = vmatprep.mubr.msk.f32.mxu0 %vm2546_vm1, %v2544_v2 }
0x1100   :  { %v1459_v62 = vpop.f32.mrf.mxu0 }
0x1101   :  { %v1460_v42 = vadd.f32 %v1459_v62, %v2718_v56 }
0x1102   :  { %v1461_v41 = vpop.f32.mrf.mxu0 }
0x1103   :  { %v1462_v43 = vadd.f32 %v1461_v41, %v2741_v15 }
0x1104   :  { %v1463_v52 = vpop.f32.mrf.mxu0 }
0x1106   :  { %v1464_v54 = vpop.f32.mrf.mxu0 }
0x1110   :  { %v1577_v46 = vpop.f32.mrf.mxu0 }
0x1111   :  { %v1584_v44 = vadd.f32 %v1577_v46, %v1460_v42 }
0x1112   :  { %v1579_v55 = vpop.f32.mrf.mxu0 }
0x1113   :  { %v1585_v45 = vadd.f32 %v1579_v55, %v1462_v43  ;;  %v2183_v28 = vmul.f32 -1.442695, %v1584_v44 }
0x1114   :  { %v1581_v59 = vpop.f32.mrf.mxu0 }
0x1115   :  { %2454 = vtanh.f32 %v1585_v45  ;;  %v2184_v39 = vmul.f32 -1.442695, %v1585_v45 }
0x1116   :  { %v1582_v50 = vpop.f32.mrf.mxu0 }
0x1120   :  { %v1698_v0 = vpop.f32.mrf.mxu0 }
0x1121   :  { %v1705_v60 = vadd.f32 %v2185_v10, %v1698_v0 }
0x1122   :  { %v1700_v4 = vpop.f32.mrf.mxu0  ;;  %v2455_v5 = vpop.eup %2454 }
0x1123   :  { %1601 = vrot.lane.b32.xlu1 %v2455_v5, %s2545_s18  ;;  %v1706_v8 = vadd.f32 %v2186_v24, %v1700_v4  ;;  %v2189_v40 = vmul.f32 -1.442695, %v1705_v60  ;;  %v1835_v24 = vld [vmem:[%s3182_s3 + $0x30] sm:$0xff]  ;;  %v1834_v4 = vld [vmem:[%s3182_s3 + $0x28] sm:$0xff]  ;;  %v1833_v5 = vld [vmem:[%s3182_s3 + $0x20] sm:$0xff] }
0x1124   :  { %v1702_v7 = vpop.f32.mrf.mxu0 }
0x1125   :  { %2456 = vtanh.f32 %v1706_v8  ;;  %v1832_v7 = vld [vmem:[%s3182_s3 + $0x18] sm:$0xff] }
0x1126   :  { %v1703_v58 = vpop.f32.mrf.mxu0  ;;  %2458 = vpow2.f32 %v2183_v28 }
0x1127   :  { %2460 = vpow2.f32 %v2189_v40  ;;  %v1830_v58 = vld [vmem:[%s3182_s3 + $0x8] sm:$0xff]  ;;  %v1921_v40 = vld [vmem:[%s3184_s5 + $0x18] sm:$0xff] }
0x1132   :  { %v2457_v9 = vpop.eup %2456 }
0x1133   :  { %1722 = vrot.lane.b32.xlu0 %v2457_v9, %s2545_s18  ;;  %v2459_v14 = vpop.eup %2458 }
0x1134   :  { %v1592_v57 = vadd.f32 1.0, %v2459_v14  ;;  %v2461_v63 = vpop.eup %2460  ;;  %v1829_v14 = vld [vmem:[%s3182_s3] sm:$0xff] }
0x1135   :  { %v1713_v61 = vadd.f32 1.0, %v2461_v63 }
0x1136   :  { %2462 = vrcp.f32 %v1592_v57  ;;  %v1920_v57 = vld [vmem:[%s3184_s5 + $0x10] sm:$0xff] }
0x1137   :  { %2464 = vrcp.f32 %v1713_v61 }
0x1143   :  { %v2463_v32 = vpop.eup %2462 }
0x1144   :  { %v2465_v34 = vpop.eup %2464  ;;  %v1599_v17 = vmul.f32 %v2463_v32, %v3037_v36  ;;  %v2190_v36 = vmul.f32 -1.442695, %v1706_v8  ;;  %v1831_v8 = vld [vmem:[%s3182_s3 + $0x10] sm:$0xff] }
0x1145   :  { %v1720_v3 = vmul.f32 %v2465_v34, %v3042_v20 }
0x1195   :  { %v1602_v16 = vpop.permute.xlu1 %1601 }
0x1196   :  { %v1604_v33 = vmul.f32 %v2463_v32, %v1602_v16 }
0x1198   :  { %1606 = vrot.lane.b32.xlu1 %v1604_v33, %s2545_s18 }
0x11a5   :  { %v1723_v35 = vpop.permute.xlu0 %1722 }
0x11a6   :  { %v1725_v38 = vmul.f32 %v2465_v34, %v1723_v35 }
0x11a8   :  { %1727 = vrot.lane.b32.xlu0 %v1725_v38, %s2545_s18 }
0x120a   :  { %v1607_v18 = vpop.permute.xlu1 %1606 }
0x120b   :  { %v3080_v22 = vadd.f32 %v1607_v18, %v1599_v17  ;;  %v1919_v17 = vld [vmem:[%s3184_s5 + $0x8] sm:$0xff]  ;;  %v1918_v18 = vld [vmem:[%s3184_s5] sm:$0xff] }
0x120d   :  { %2466 = vtanh.f32 %v3080_v22 }
0x121a   :  { %v2467_v23 = vpop.eup %2466  ;;  %v1728_v25 = vpop.permute.xlu0 %1727 }
0x121b   :  { %1612 = vrot.lane.b32.xlu1 %v2467_v23, %s2545_s18  ;;  %v1730_v26 = vadd.f32 %v1728_v25, %v1720_v3 }
0x121d   :  { %2468 = vtanh.f32 %v1730_v26 }
0x121e   :  { %2470 = vpow2.f32 %v2184_v39  ;;  %v2004_v39 = vld [vmem:[%s3186_s7] sm:$0xff] }
0x121f   :  { %2472 = vpow2.f32 %v2190_v36 }
0x122a   :  { %v2469_v27 = vpop.eup %2468 }
0x122b   :  { %1733 = vrot.lane.b32.xlu0 %v2469_v27, %s2545_s18  ;;  %v2471_v49 = vpop.eup %2470  ;;  %v2005_v27 = vld [vmem:[%s3186_s7 + $0x8] sm:$0xff] }
0x122c   :  { %v1593_v53 = vadd.f32 1.0, %v2471_v49  ;;  %v2473_v6 = vpop.eup %2472  ;;  %v2196_v49 = vld [vmem:[%s3185_s6] ss:$0 sm:$0xff] }
0x122d   :  { %v1714_v48 = vadd.f32 1.0, %v2473_v6 }
0x122e   :  { %2474 = vrcp.f32 %v1593_v53 }
0x122f   :  { %2476 = vrcp.f32 %v1714_v48 }
0x123b   :  { %v2475_v21 = vpop.eup %2474 }
0x123c   :  { %v2477_v20 = vpop.eup %2476 }
0x128d   :  { %v1613_v37 = vpop.permute.xlu1 %1612 }
0x128e   :  { %v1615_v47 = vmul.f32 %v2475_v21, %v1613_v37  ;;  %v2198_v37 = vld [vmem:[#allocation6] ss:$0 sm:$0xff] }
0x1290   :  { %v1619_v51 = vpack.c.bf16 %v1615_v47, %v1615_v47 }
0x1292   :  { %2187 = vmatmul.mubr.msk.bf16.vlgmr.msra.gmra.mxu1 %vm53_vm0, %v1619_v51 }
0x1293   :  { %1750 = vmatpush1.bf16.msra.mxu1 %v2990_v29  ;;  %1773 = vmatprep.mubr.bf16.mxu1 %v2543_v1 }
0x1294   :  { %1751 = vmatprep.subr.bf16.mxu1 %v2994_v11 }
0x1297   :  { %1752 = vmatpush1.bf16.msra.mxu1 %v2997_v12 }
0x1298   :  { %1753 = vmatprep.subr.bf16.mxu1 %v3000_v30 }
0x129b   :  { %1754 = vmatpush1.bf16.msra.mxu1 %v3003_v13 }
0x129c   :  { %1755 = vmatprep.subr.bf16.mxu1 %v3006_v19 }
0x129d   :  { %v1734_v62 = vpop.permute.xlu0 %1733 }
0x129e   :  { %v1736_v41 = vmul.f32 %v2477_v20, %v1734_v62 }
0x129f   :  { %1756 = vmatpush1.bf16.msra.mxu1 %v3009_v31 }
0x12a0   :  { %2237 = vmatprep.subr.mxu1 %v2544_v2  ;;  %v1737_v29 = vpack.c.bf16 %v1736_v41, %v1736_v41  ;;  %1814 = vst.msk [vmem:[#allocation2] sm:$0xff] %vm53_vm0, %v1736_v41 }
0x12a2   :  { %2191 = vmatmul.mubr.msk.bf16.vlgmr.msra.gmra.mxu1 %vm53_vm0, %v1737_v29 }
0x12a3   :  { %2245 = vmatprep.mubr.msk.f32.mxu1 %vm2546_vm1, %v2544_v2  ;;  %2238 = vmatpush3.msra.mxu1 %v1921_v40 }
0x12a4   :  { %2239 = vmatprep.subr.mxu1 %v2544_v2 }
0x12a5   :  { %2240 = vmatpush3.msra.mxu1 %v1920_v57 }
0x12a6   :  { %2241 = vmatprep.subr.mxu1 %v2544_v2 }
0x12a7   :  { %2242 = vmatpush3.msra.mxu1 %v1919_v17 }
0x12a8   :  { %2243 = vmatprep.subr.mxu1 %v2544_v2 }
0x12a9   :  { %2244 = vmatpush3.msra.mxu1 %v1918_v18 }
0x12aa   :  { %2248 = vmatprep.subr.mxu1 %v2544_v2 }
0x1352   :  { %v1657_v1 = vpop.f32.mrf.mxu1 }
0x1353   :  { %v1658_v13 = vadd.f32 %v1657_v1, %v2718_v56 }
0x1354   :  { %v1659_v11 = vpop.f32.mrf.mxu1 }
0x1355   :  { %v1660_v19 = vadd.f32 %v1659_v11, %v2741_v15  ;;  %v1836_v15 = vld [vmem:[%s3182_s3 + $0x38] sm:$0xff] }
0x1356   :  { %v1661_v12 = vpop.f32.mrf.mxu1  ;;  %2219 = vmatpush3.msra.mxu0 %v1836_v15 }
0x1357   :  { %2220 = vmatprep.subr.mxu0 %v2544_v2 }
0x1358   :  { %v1662_v30 = vpop.f32.mrf.mxu1  ;;  %2221 = vmatpush3.msra.mxu0 %v1835_v24 }
0x1359   :  { %2222 = vmatprep.subr.mxu0 %v2544_v2 }
0x135a   :  { %2223 = vmatpush3.msra.mxu0 %v1834_v4 }
0x135b   :  { %2224 = vmatprep.subr.mxu0 %v2544_v2 }
0x135c   :  { %2225 = vmatpush3.msra.mxu0 %v1833_v5 }
0x135d   :  { %2226 = vmatprep.subr.mxu0 %v2544_v2 }
0x135e   :  { %2227 = vmatpush3.msra.mxu0 %v1832_v7 }
0x135f   :  { %2228 = vmatprep.subr.mxu0 %v2544_v2 }
0x1360   :  { %2229 = vmatpush3.msra.mxu0 %v1831_v8 }
0x1361   :  { %2230 = vmatprep.subr.mxu0 %v2544_v2 }
0x1362   :  { %v1775_v52 = vpop.f32.mrf.mxu1  ;;  %2231 = vmatpush3.msra.mxu0 %v1830_v58 }
0x1363   :  { %v1782_v31 = vadd.f32 %v1775_v52, %v1658_v13  ;;  %2232 = vmatprep.subr.mxu0 %v2544_v2 }
0x1364   :  { %v1777_v54 = vpop.f32.mrf.mxu1  ;;  %2233 = vmatpush3.msra.mxu0 %v1829_v14 }
0x1365   :  { %v1783_v42 = vadd.f32 %v1777_v54, %v1660_v19  ;;  %v2192_v55 = vmul.f32 -1.442695, %v1782_v31 }
0x1366   :  { %v1779_v46 = vpop.f32.mrf.mxu1 }
0x1367   :  { %2478 = vtanh.f32 %v1783_v42  ;;  %v2193_v32 = vmul.f32 -1.442695, %v1783_v42 }
0x1368   :  { %v1780_v43 = vpop.f32.mrf.mxu1  ;;  %2480 = vpow2.f32 %v2192_v55 }
0x1374   :  { %v2479_v44 = vpop.eup %2478 }
0x1375   :  { %1799 = vrot.lane.b32.xlu1 %v2479_v44, %s2545_s18  ;;  %v2481_v45 = vpop.eup %2480 }
0x1376   :  { %v1790_v59 = vadd.f32 1.0, %v2481_v45 }
0x1378   :  { %2482 = vrcp.f32 %v1790_v59 }
0x1385   :  { %v2483_v50 = vpop.eup %2482 }
0x1386   :  { %v1797_v9 = vmul.f32 %v2483_v50, %v3080_v22  ;;  %v2194_v22 = vld [vmem:[%s3183_s4] ss:$0 sm:$0xff] }
0x13e7   :  { %v1800_v0 = vpop.permute.xlu1 %1799 }
0x13e8   :  { %v1802_v56 = vmul.f32 %v2483_v50, %v1800_v0 }
0x13ea   :  { %1804 = vrot.lane.b32.xlu0 %v1802_v56, %s2545_s18 }
0x13ee   :  { %1816 = vrot.lane.b32.xlu0 %v1730_v26, %s2545_s18 }
0x145c   :  { %v1805_v28 = vpop.permute.xlu0 %1804 }
0x145d   :  { %v1807_v10 = vadd.f32 %v1805_v28, %v1797_v9 }
0x145f   :  { %2484 = vtanh.f32 %v1807_v10 }
0x1460   :  { %v1817_v60 = vpop.permute.xlu0 %1816  ;;  %2486 = vpow2.f32 %v2193_v32 }
0x1461   :  { %1819 = vst.msk [vmem:[#allocation3] sm:$0xff] %vm53_vm0, %v1817_v60 }
0x146c   :  { %v2485_v63 = vpop.eup %2484 }
0x146d   :  { %1810 = vrot.lane.b32.xlu1 %v2485_v63, %s2545_s18  ;;  %v2487_v16 = vpop.eup %2486 }
0x146e   :  { %v1791_v33 = vadd.f32 1.0, %v2487_v16 }
0x1470   :  { %2488 = vrcp.f32 %v1791_v33 }
0x1471   :  { %1822 = vrot.lane.b32.xlu1 %v1807_v10, %s2545_s18 }
0x147d   :  { %v2489_v61 = vpop.eup %2488 }
0x14df   :  { %v1811_v34 = vpop.permute.xlu1 %1810 }
0x14e0   :  { %v1813_v35 = vmul.f32 %v2489_v61, %v1811_v34 }
0x14e2   :  { %1820 = vst.msk [vmem:[#allocation4] sm:$0xff] %vm53_vm0, %v1813_v35  ;;  %2235 = vmatmul.mubr.msk.f32.vlgmr.msra.gmra.mxu0 %vm53_vm0, %v1813_v35 }
0x14e3   :  { %v1823_v38 = vpop.permute.xlu1 %1822 }
0x14e4   :  { %1825 = vst.msk [vmem:[#allocation5] sm:$0xff] %vm53_vm0, %v1823_v38 }
0x15a2   :  { %v1913_v23 = vpop.f32.mrf.mxu0 }
0x15a3   :  { %v1914_v3 = vadd.f32 %v2194_v22, %v1913_v23 }
0x15a4   :  { %v2236_v25 = vpop.f32.mrf.mxu0 }
0x15a5   :  { %v1917_v26 = vmax.f32 %v1914_v3, 0.0 }
0x15a7   :  { %2246 = vmatmul.mubr.msk.f32.vlgmr.msra.gmra.mxu1 %vm1929_vm2, %v1917_v26 }
0x15a8   :  { %2252 = vmatprep.mubr.msk.f32.mxu1 %vm2546_vm1, %v2544_v2  ;;  %2249 = vmatpush3.msra.mxu1 %v2005_v27 }
0x15a9   :  { %2250 = vmatprep.subr.mxu1 %v2544_v2 }
0x15aa   :  { %2251 = vmatpush3.msra.mxu1 %v2004_v39 }
0x1667   :  { %v1999_v36 = vpop.f32.mrf.mxu1 }
0x1668   :  { %v2000_v53 = vadd.f32 %v2196_v49, %v1999_v36 }
0x1669   :  { %v2247_v6 = vpop.f32.mrf.mxu1 }
0x166a   :  { %v2003_v21 = vmax.f32 %v2000_v53, 0.0 }
0x166c   :  { %2253 = vmatmul.mubr.msk.f32.vlgmr.msra.gmra.mxu1 %vm2013_vm3, %v2003_v21 }
0x172c   :  { %v2083_v47 = vpop.f32.mrf.mxu1 }
0x172d   :  { %v2084_v48 = vadd.f32 %v2198_v37, %v2083_v47 }
0x172e   :  { %v2254_v51 = vpop.f32.mrf.mxu1 }
0x172f   :  { %v2200_v2 = vmul.f32 -1.442695, %v2084_v48 }
0x1731   :  { %2490 = vpow2.f32 %v2200_v2 }
0x173e   :  { %v2491_v20 = vpop.eup %2490 }
0x173f   :  { %v2090_v62 = vadd.f32 1.0, %v2491_v20 }
0x1741   :  { %2492 = vrcp.f32 %v2090_v62 }
0x174e   :  { %v2493_v41 = vpop.eup %2492 }
0x174f   :  { %2094 = vst.msk [vmem:[%s3188_s9] sm:$0xff] %vm2093_vm4, %v2493_v41 }
0x1750   :  { %2099 = vsyncpa [#allocation8], 1 }

</bundles_post_ra>
